<compile_context>
chip_gen: v7x
topology: tpu7x:2x2x1
jax: 0.10.0
libtpu: 0.0.40
codegen_flags: <defaults>
</compile_context>

<pallas_src>
import functools
import math

import jax
import jax.numpy as jnp
from jax.experimental import pallas as pl
from jax.experimental.pallas import tpu as pltpu


def _round_up(x, m):
    return ((x + m - 1) // m) * m


# Above the default scoped VMEM limits (16 MiB v5e / 32 MiB v6e-v7x), below v7x physical 64 MiB.
_VMEM_LIMIT_BYTES = 48 * 1024 * 1024
_LN_EPS = 1e-5


def _layernorm_rows(x, gamma, beta, d_real, eps):
    """Row-wise LayerNorm over the last axis of a zero-column-padded f32 tile.

    Padded columns of x / gamma / beta are zero, so the mean uses sum/d_real directly
    and padded columns of the result stay exactly zero."""
    d_pad = x.shape[-1]
    mu = jnp.sum(x, axis=-1, keepdims=True) * (1.0 / d_real)
    xc = x - mu
    if d_pad != d_real:
        col = jax.lax.broadcasted_iota(jnp.int32, x.shape, x.ndim - 1)
        xc = jnp.where(col < d_real, xc, 0.0)
    var = jnp.sum(xc * xc, axis=-1, keepdims=True) * (1.0 / d_real)
    inv = jax.lax.rsqrt(var + eps)
    return xc * inv * gamma + beta


# --------------------------------------------------------------------------- #
# Fused LayerNorm1 + multi-head attention + residual
# --------------------------------------------------------------------------- #
def mha_ln_kernel(xq_ref, xkv_ref, wq_ref, bq_ref, wkv_ref, bkv_ref,
                  wo_ref, bo_ref, g1_ref, be1_ref, o_ref, *,
                  num_heads, d_k, d_v, d_model, seq_len, scale, mask_attention):
    tq = xq_ref.shape[1]
    S = xkv_ref.shape[1]
    qi = pl.program_id(1)

    g1 = g1_ref[...].astype(jnp.float32)
    be1 = be1_ref[...].astype(jnp.float32)

    # Fused pre-norm (LayerNorm1) of the query tile and of the full KV sequence.
    xq = xq_ref[0].astype(jnp.float32)                              # (tq, Dp)
    xn_q = _layernorm_rows(xq, g1, be1, d_model, _LN_EPS)
    xn_kv = _layernorm_rows(xkv_ref[0].astype(jnp.float32), g1, be1, d_model, _LN_EPS)

    # Fused projections: one wide Q matmul, one wide K|V matmul (contraction = d_model).
    hdk = num_heads * d_k
    q = jnp.dot(xn_q, wq_ref[...], preferred_element_type=jnp.float32) + bq_ref[...]
    kv = jnp.dot(xn_kv, wkv_ref[...], preferred_element_type=jnp.float32) + bkv_ref[...]
    k = kv[:, :hdk]
    v = kv[:, hdk:]

    # Causal (+ KV-padding) mask for this query tile.
    row = jax.lax.broadcasted_iota(jnp.int32, (tq, S), 0) + qi * tq
    col = jax.lax.broadcasted_iota(jnp.int32, (tq, S), 1)
    valid = col < seq_len
    if mask_attention:
        valid = jnp.logical_and(valid, row >= col)

    heads = []
    for h in range(num_heads):
        qh = q[:, h * d_k:(h + 1) * d_k]
        kh = k[:, h * d_k:(h + 1) * d_k]
        vh = v[:, h * d_v:(h + 1) * d_v]
        s = jax.lax.dot_general(qh, kh, (((1,), (1,)), ((), ())),
                                preferred_element_type=jnp.float32) * scale
        s = jnp.where(valid, s, -jnp.inf)
        s = s - jnp.max(s, axis=-1, keepdims=True)
        p = jnp.exp(s)
        denom = jnp.sum(p, axis=-1, keepdims=True)
        inv = pl.reciprocal(denom, approx=True)
        inv = inv * (2.0 - denom * inv)      # one Newton step -> ~f32-exact, still EUP-fed
        p = p * inv
        heads.append(jnp.dot(p, vh, preferred_element_type=jnp.float32))

    # Single wide output projection over all heads (contraction = H*d_v) + fused residual.
    att = jnp.concatenate(heads, axis=-1)                            # (tq, H*d_v)
    out = jnp.dot(att, wo_ref[...], preferred_element_type=jnp.float32) + bo_ref[...]
    # TODO(synk): attention-prob dropout and output dropout are eval-mode identity.
    o_ref[0] = (xq + out).astype(o_ref.dtype)


def mha_block(xp, params, *, num_heads, d_model, seq_len, mask_attention, tq):
    """xp: (B, S_pad, Dp) zero-padded; returns x + MHA(LN1(x)) in the same padded layout."""
    B, S_pad, Dp = xp.shape
    hdk = params["wq_t"].shape[1]
    hdv = params["wkv_t"].shape[1] - hdk
    d_k = hdk // num_heads
    d_v = hdv // num_heads
    scale = 1.0 / math.sqrt(d_k)
    n_q = S_pad // tq

    kernel = functools.partial(
        mha_ln_kernel, num_heads=num_heads, d_k=d_k, d_v=d_v, d_model=d_model,
        seq_len=seq_len, scale=scale, mask_attention=mask_attention)

    full = lambda b, qi: (0, 0)
    flops = int(2 * B * S_pad * Dp * hdk
                + 2 * B * n_q * S_pad * Dp * (hdk + hdv)
                + 2 * B * S_pad * S_pad * (hdk + hdv)
                + 2 * B * S_pad * hdv * Dp)
    weight_bytes = 4 * (params["wq_t"].size + params["wkv_t"].size + params["wo_t"].size)
    bytes_accessed = int(4 * B * S_pad * Dp * (2 + n_q) + B * n_q * weight_bytes)

    return pl.pallas_call(
        kernel,
        out_shape=jax.ShapeDtypeStruct((B, S_pad, Dp), xp.dtype),
        grid_spec=pltpu.PrefetchScalarGridSpec(
            num_scalar_prefetch=0,
            grid=(B, n_q),
            in_specs=[
                pl.BlockSpec((1, tq, Dp), lambda b, qi: (b, qi, 0)),
                pl.BlockSpec((1, S_pad, Dp), lambda b, qi: (b, 0, 0)),
                pl.BlockSpec(params["wq_t"].shape, full),
                pl.BlockSpec(params["bq"].shape, full),
                pl.BlockSpec(params["wkv_t"].shape, full),
                pl.BlockSpec(params["bkv"].shape, full),
                pl.BlockSpec(params["wo_t"].shape, full),
                pl.BlockSpec(params["bo"].shape, full),
                pl.BlockSpec(params["ln1_g"].shape, full),
                pl.BlockSpec(params["ln1_b"].shape, full),
            ],
            out_specs=pl.BlockSpec((1, tq, Dp), lambda b, qi: (b, qi, 0)),
        ),
        compiler_params=pltpu.CompilerParams(
            dimension_semantics=("parallel", "parallel"),
            vmem_limit_bytes=_VMEM_LIMIT_BYTES),
        cost_estimate=pl.CostEstimate(
            flops=flops,
            transcendentals=int(B * S_pad * S_pad * num_heads),
            bytes_accessed=bytes_accessed),
    )(xp, xp, params["wq_t"], params["bq"], params["wkv_t"], params["bkv"],
      params["wo_t"], params["bo"], params["ln1_g"], params["ln1_b"])


# --------------------------------------------------------------------------- #
# Fused LayerNorm2 + FeedForward (linear1 -> ReLU -> linear2) + residual
# --------------------------------------------------------------------------- #
def ffn_ln_kernel(x_ref, w1_ref, b1_ref, w2_ref, b2_ref, g2_ref, be2_ref,
                  o_ref, acc_ref, xn_ref, *, d_model):
    k = pl.program_id(1)

    @pl.when(k == 0)
    def _():
        x = x_ref[...].astype(jnp.float32)
        xn_ref[...] = _layernorm_rows(x, g2_ref[...].astype(jnp.float32),
                                      be2_ref[...].astype(jnp.float32),
                                      d_model, _LN_EPS)
        acc_ref[...] = jnp.zeros_like(acc_ref)

    h = jnp.dot(xn_ref[...], w1_ref[...], preferred_element_type=jnp.float32)
    h = jnp.maximum(h + b1_ref[...], 0.0)                            # bias + ReLU (f32)
    acc_ref[...] += jnp.dot(h.astype(w2_ref.dtype), w2_ref[...],
                            preferred_element_type=jnp.float32)

    @pl.when(k == pl.num_programs(1) - 1)
    def _():
        # TODO(synk): training-mode dropout mask/scale not emitted (eval identity).
        o_ref[...] = (acc_ref[...] + b2_ref[...]
                      + x_ref[...].astype(jnp.float32)).astype(o_ref.dtype)


def ffn_block(xp, params, *, d_model, tq, tm_max=512, tf=512):
    """xp: (B, S_pad, Dp) zero-padded; returns x + FFN(LN2(x)) in the same padded layout."""
    B, S_pad, Dp = xp.shape
    M = B * S_pad
    x2d = xp.reshape(M, Dp)
    ff = params["ff"]
    w1_t, b1p, w2_t, b2p = ff["w1_t"], ff["b1"], ff["w2_t"], ff["b2"]
    d_ff_pad = w1_t.shape[1]

    tf_eff = tf if (d_ff_pad >= tf and d_ff_pad % tf == 0) else d_ff_pad
    tm_eff = tq
    for mult in (4, 2):                        # widen token tile when it still divides M
        cand = tq * mult
        if cand <= tm_max and M % cand == 0:
            tm_eff = cand
            break

    flops = int(4 * M * Dp * d_ff_pad)
    bytes_accessed = int(4 * (2 * M * Dp + (M // tm_eff) * (w1_t.size + w2_t.size)))

    out = pl.pallas_call(
        functools.partial(ffn_ln_kernel, d_model=d_model),
        out_shape=jax.ShapeDtypeStruct((M, Dp), xp.dtype),
        grid_spec=pltpu.PrefetchScalarGridSpec(
            num_scalar_prefetch=0,
            grid=(M // tm_eff, d_ff_pad // tf_eff),                  # reduction axis last
            in_specs=[
                pl.BlockSpec((tm_eff, Dp), lambda i, k: (i, 0)),
                pl.BlockSpec((Dp, tf_eff), lambda i, k: (0, k)),
                pl.BlockSpec((1, tf_eff), lambda i, k: (0, k)),
                pl.BlockSpec((tf_eff, Dp), lambda i, k: (k, 0)),
                pl.BlockSpec((1, Dp), lambda i, k: (0, 0)),
                pl.BlockSpec(params["ln2_g"].shape, lambda i, k: (0, 0)),
                pl.BlockSpec(params["ln2_b"].shape, lambda i, k: (0, 0)),
            ],
            out_specs=pl.BlockSpec((tm_eff, Dp), lambda i, k: (i, 0)),
            scratch_shapes=[pltpu.VMEM((tm_eff, Dp), jnp.float32),   # accumulator
                            pltpu.VMEM((tm_eff, Dp), jnp.float32)],  # cached LN2(x) tile
        ),
        compiler_params=pltpu.CompilerParams(
            dimension_semantics=("parallel", "arbitrary"),
            vmem_limit_bytes=_VMEM_LIMIT_BYTES),
        cost_estimate=pl.CostEstimate(flops=flops, transcendentals=0,
                                      bytes_accessed=bytes_accessed),
    )(x2d, w1_t, b1p, w2_t, b2p, params["ln2_g"], params["ln2_b"])
    return out.reshape(B, S_pad, Dp)


# --------------------------------------------------------------------------- #
# Full OnlyDecoderBlock forward (pre_norm=True path, eval mode)
# --------------------------------------------------------------------------- #
@functools.partial(jax.jit, static_argnames=("num_heads", "mask_attention"))
def only_decoder_block_forward(x, params, *, num_heads, mask_attention=True):
    B, S, D = x.shape
    Dp = params["wq_t"].shape[0]

    # Query tiling: a single tile per batch for short sequences (no KV-proj recompute),
    # 256-row tiles for long ones (bounded (tq, S) score footprint in VMEM).
    S8 = _round_up(S, 8)
    if S8 <= 512:
        tq, S_pad = S8, S8
    else:
        tq = 256
        S_pad = _round_up(S, tq)

    needs_pad = (S_pad != S) or (Dp != D)
    if needs_pad:
        xp = jnp.zeros((B, S_pad, Dp), x.dtype).at[:, :S, :D].set(x)
    else:
        xp = x

    y = mha_block(xp, params, num_heads=num_heads, d_model=D, seq_len=S,
                  mask_attention=mask_attention, tq=tq)               # x + MHA(LN1(x))
    z = ffn_block(y, params, d_model=D, tq=tq)                        # y + FFN(LN2(y))

    return z[:, :S, :D] if needs_pad else z


# --------------------------------------------------------------------------- #
# Parameter preparation (ONE-TIME: transpose to (in,out), fuse Q / K|V / FFN weights,
# zero-pad d_model to a 128-lane multiple).  weights_dtype=jnp.bfloat16 enables the
# bf16-MXU path on v6e/v7x (accumulation stays f32).
# --------------------------------------------------------------------------- #
def prepare_params(raw, *, tf=512, weights_dtype=jnp.float32):
    d_model = raw["wo"].shape[0]
    num_heads, d_k, _ = raw["wq"].shape
    d_v = raw["wv"].shape[1]
    Dp = _round_up(d_model, 128)

    def pack_heads(w):     # (H, d_out, d_model) PyTorch layout -> (Dp, H*d_out)
        wt = jnp.transpose(w, (2, 0, 1)).reshape(d_model, -1).astype(weights_dtype)
        return jnp.zeros((Dp, wt.shape[1]), weights_dtype).at[:d_model, :].set(wt)

    wq_t = pack_heads(raw["wq"])
    wkv_t = jnp.concatenate([pack_heads(raw["wk"]), pack_heads(raw["wv"])], axis=1)
    bq = raw["bq"].reshape(1, num_heads * d_k).astype(weights_dtype)
    bkv = jnp.concatenate([raw["bk"].reshape(1, -1),
                           raw["bv"].reshape(1, -1)], axis=1).astype(weights_dtype)
    wo_t = (jnp.zeros((num_heads * d_v, Dp), weights_dtype)
            .at[:, :d_model].set(raw["wo"].T.astype(weights_dtype)))
    bo = jnp.zeros((1, Dp), weights_dtype).at[0, :d_model].set(raw["bo"].astype(weights_dtype))

    def pad_vec(v):
        return jnp.zeros((1, Dp), jnp.float32).at[0, :d_model].set(v.astype(jnp.float32))

    w1, b1, w2, b2 = raw["w1"], raw["b1"], raw["w2"], raw["b2"]
    d_ff = w1.shape[0]
    d_ff_pad = _round_up(d_ff, tf) if d_ff >= tf else _round_up(d_ff, 128)
    ff = {
        "w1_t": (jnp.zeros((Dp, d_ff_pad), weights_dtype)
                 .at[:d_model, :d_ff].set(w1.T.astype(weights_dtype))),
        "b1": jnp.zeros((1, d_ff_pad), weights_dtype).at[0, :d_ff].set(b1.astype(weights_dtype)),
        "w2_t": (jnp.zeros((d_ff_pad, Dp), weights_dtype)
                 .at[:d_ff, :d_model].set(w2.T.astype(weights_dtype))),
        "b2": jnp.zeros((1, Dp), weights_dtype).at[0, :d_model].set(b2.astype(weights_dtype)),
    }

    return {
        "ln1_g": pad_vec(raw["g1"]), "ln1_b": pad_vec(raw["be1"]),
        "ln2_g": pad_vec(raw["g2"]), "ln2_b": pad_vec(raw["be2"]),
        "wq_t": wq_t, "bq": bq, "wkv_t": wkv_t, "bkv": bkv,
        "wo_t": wo_t, "bo": bo, "ff": ff,
    }


# --------------------------------------------------------------------------- #
# Pure-JAX reference (matches PyTorch semantics, eval mode, pre_norm=True)
# --------------------------------------------------------------------------- #
def reference_forward(x, raw, *, num_heads):
    def ln(z, g, b):
        mu = z.mean(-1, keepdims=True)
        var = ((z - mu) ** 2).mean(-1, keepdims=True)
        return (z - mu) / jnp.sqrt(var + 1e-5) * g + b

    S = x.shape[1]
    xn1 = ln(x, raw["g1"], raw["be1"])
    mask = jnp.tril(jnp.ones((S, S)))
    heads = []
    for h in range(num_heads):
        q = xn1 @ raw["wq"][h].T + raw["bq"][h]
        k = xn1 @ raw["wk"][h].T + raw["bk"][h]
        v = xn1 @ raw["wv"][h].T + raw["bv"][h]
        s = q @ jnp.swapaxes(k, -1, -2) / jnp.sqrt(jnp.float32(q.shape[-1]))
        s = jnp.where(mask == 0, -jnp.inf, s)
        p = jax.nn.softmax(s, axis=-1)
        heads.append(p @ v)
    a = jnp.concatenate(heads, axis=-1) @ raw["wo"].T + raw["bo"]
    xr = x + a
    xn2 = ln(xr, raw["g2"], raw["be2"])
    f = jnp.maximum(xn2 @ raw["w1"].T + raw["b1"], 0.0) @ raw["w2"].T + raw["b2"]
    return xr + f


if __name__ == "__main__":
    # Small shapes consistent with the module.
    B, S, d_model, num_heads, d_ff = 2, 8, 32, 4, 64
    drop_prob = 0.1          # eval mode -> identity
    mask_attention = True    # decoder block
    d_k = d_v = d_model // num_heads

    key = jax.random.PRNGKey(0)
    ks = jax.random.split(key, 17)

    x = jax.random.normal(ks[0], (B, S, d_model), dtype=jnp.float32)
    raw = {
        # per-head QKV linears, PyTorch Linear layout (out_features, in_features)
        "wq": jax.random.normal(ks[1], (num_heads, d_k, d_model)) * 0.1,
        "bq": jax.random.normal(ks[2], (num_heads, d_k)) * 0.1,
        "wk": jax.random.normal(ks[3], (num_heads, d_k, d_model)) * 0.1,
        "bk": jax.random.normal(ks[4], (num_heads, d_k)) * 0.1,
        "wv": jax.random.normal(ks[5], (num_heads, d_v, d_model)) * 0.1,
        "bv": jax.random.normal(ks[6], (num_heads, d_v)) * 0.1,
        "wo": jax.random.normal(ks[7], (d_model, num_heads * d_v)) * 0.1,
        "bo": jax.random.normal(ks[8], (d_model,)) * 0.1,
        # LayerNorms
        "g1": 1.0 + 0.1 * jax.random.normal(ks[9], (d_model,)),
        "be1": 0.1 * jax.random.normal(ks[10], (d_model,)),
        "g2": 1.0 + 0.1 * jax.random.normal(ks[11], (d_model,)),
        "be2": 0.1 * jax.random.normal(ks[12], (d_model,)),
        # FFN (PyTorch layout)
        "w1": jax.random.normal(ks[13], (d_ff, d_model)) * 0.1,
        "b1": jax.random.normal(ks[14], (d_ff,)) * 0.1,
        "w2": jax.random.normal(ks[15], (d_model, d_ff)) * 0.1,
        "b2": jax.random.normal(ks[16], (d_model,)) * 0.1,
    }

    params = prepare_params(raw)                              # one-time packing/padding
    out = only_decoder_block_forward(x, params, num_heads=num_heads,
                                     mask_attention=mask_attention)
    out = jax.block_until_ready(out)

    ref = reference_forward(x, raw, num_heads=num_heads)
    assert out.shape == (B, S, d_model)
    err = float(jnp.max(jnp.abs(out - ref)))
    assert err < 1e-3, f"max abs err {err}"

    print("KERNEL_OK")
</pallas_src>

<mosaic_0001>
module attributes {stable_mosaic.version = 11 : i64} {
  func.func @mha_ln_kernel(%arg0: i32, %arg1: i32, %arg2: memref<1x8x128xf32, #tpu.memory_space<vmem>>, %arg3: memref<1x8x128xf32, #tpu.memory_space<vmem>>, %arg4: memref<128x32xf32, #tpu.memory_space<vmem>>, %arg5: memref<1x32xf32, #tpu.memory_space<vmem>>, %arg6: memref<128x64xf32, #tpu.memory_space<vmem>>, %arg7: memref<1x64xf32, #tpu.memory_space<vmem>>, %arg8: memref<32x128xf32, #tpu.memory_space<vmem>>, %arg9: memref<1x128xf32, #tpu.memory_space<vmem>>, %arg10: memref<1x128xf32, #tpu.memory_space<vmem>>, %arg11: memref<1x128xf32, #tpu.memory_space<vmem>>, %arg12: memref<1x8x128xf32, #tpu.memory_space<vmem>>) attributes {dimension_semantics = [#tpu.dimension_semantics<parallel>, #tpu.dimension_semantics<parallel>], iteration_bounds = array<i64: 2, 1>, scalar_prefetch = 0 : i64, scratch_operands = 0 : i64, tpu.core_type = #tpu.core_type<tc>, window_params = [{transform_indices = @transform_0, window_bounds = array<i64: 1, 8, 128>}, {transform_indices = @transform_1, window_bounds = array<i64: 1, 8, 128>}, {pipeline_mode = #tpu.pipeline_mode<synchronous>, transform_indices = @transform_2, window_bounds = array<i64: 128, 32>}, {pipeline_mode = #tpu.pipeline_mode<synchronous>, transform_indices = @transform_3, window_bounds = array<i64: 1, 32>}, {pipeline_mode = #tpu.pipeline_mode<synchronous>, transform_indices = @transform_4, window_bounds = array<i64: 128, 64>}, {pipeline_mode = #tpu.pipeline_mode<synchronous>, transform_indices = @transform_5, window_bounds = array<i64: 1, 64>}, {pipeline_mode = #tpu.pipeline_mode<synchronous>, transform_indices = @transform_6, window_bounds = array<i64: 32, 128>}, {pipeline_mode = #tpu.pipeline_mode<synchronous>, transform_indices = @transform_7, window_bounds = array<i64: 1, 128>}, {pipeline_mode = #tpu.pipeline_mode<synchronous>, transform_indices = @transform_8, window_bounds = array<i64: 1, 128>}, {pipeline_mode = #tpu.pipeline_mode<synchronous>, transform_indices = @transform_9, window_bounds = array<i64: 1, 128>}, {transform_indices = @transform_10, window_bounds = array<i64: 1, 8, 128>}]} {
    %c0 = arith.constant 0 : index
    %c0_0 = arith.constant 0 : index
    %0 = vector.load %arg10[%c0, %c0_0] : memref<1x128xf32, #tpu.memory_space<vmem>>, vector<1x128xf32>
    %c0_1 = arith.constant 0 : index
    %c0_2 = arith.constant 0 : index
    %1 = vector.load %arg11[%c0_1, %c0_2] : memref<1x128xf32, #tpu.memory_space<vmem>>, vector<1x128xf32>
    %c0_3 = arith.constant 0 : index
    %c0_4 = arith.constant 0 : index
    %c0_5 = arith.constant 0 : index
    %2 = vector.load %arg2[%c0_3, %c0_4, %c0_5] : memref<1x8x128xf32, #tpu.memory_space<vmem>>, vector<1x8x128xf32>
    %3 = vector.shape_cast %2 : vector<1x8x128xf32> to vector<8x128xf32>
    %cst = arith.constant dense<0.000000e+00> : vector<8xf32>
    %4 = vector.multi_reduction <add>, %3, %cst [1] : vector<8x128xf32> to vector<8xf32>
    %5 = vector.shape_cast %4 : vector<8xf32> to vector<8x1xf32>
    %cst_6 = arith.constant 3.125000e-02 : f32
    %6 = vector.broadcast %cst_6 : f32 to vector<8x1xf32>
    %7 = arith.mulf %5, %6 : vector<8x1xf32>
    %8 = vector.broadcast %7 : vector<8x1xf32> to vector<8x128xf32>
    %9 = arith.subf %3, %8 : vector<8x128xf32>
    %10 = tpu.iota {dimensions = array<i32: 1>} : vector<8x128xi32>
    %c32_i32 = arith.constant 32 : i32
    %11 = vector.broadcast %c32_i32 : i32 to vector<8x128xi32>
    %12 = arith.cmpi slt, %10, %11 : vector<8x128xi32>
    %cst_7 = arith.constant 0.000000e+00 : f32
    %13 = vector.broadcast %cst_7 : f32 to vector<8x128xf32>
    %14 = arith.select %12, %9, %13 : vector<8x128xi1>, vector<8x128xf32>
    %15 = arith.mulf %14, %14 : vector<8x128xf32>
    %cst_8 = arith.constant dense<0.000000e+00> : vector<8xf32>
    %16 = vector.multi_reduction <add>, %15, %cst_8 [1] : vector<8x128xf32> to vector<8xf32>
    %17 = vector.shape_cast %16 : vector<8xf32> to vector<8x1xf32>
    %cst_9 = arith.constant 3.125000e-02 : f32
    %18 = vector.broadcast %cst_9 : f32 to vector<8x1xf32>
    %19 = arith.mulf %17, %18 : vector<8x1xf32>
    %cst_10 = arith.constant 9.99999974E-6 : f32
    %20 = vector.broadcast %cst_10 : f32 to vector<8x1xf32>
    %21 = arith.addf %19, %20 : vector<8x1xf32>
    %22 = math.rsqrt %21 : vector<8x1xf32>
    %23 = vector.broadcast %22 : vector<8x1xf32> to vector<8x128xf32>
    %24 = arith.mulf %14, %23 : vector<8x128xf32>
    %25 = vector.broadcast %0 : vector<1x128xf32> to vector<8x128xf32>
    %26 = arith.mulf %24, %25 : vector<8x128xf32>
    %27 = vector.broadcast %1 : vector<1x128xf32> to vector<8x128xf32>
    %28 = arith.addf %26, %27 : vector<8x128xf32>
    %c0_11 = arith.constant 0 : index
    %c0_12 = arith.constant 0 : index
    %c0_13 = arith.constant 0 : index
    %29 = vector.load %arg3[%c0_11, %c0_12, %c0_13] : memref<1x8x128xf32, #tpu.memory_space<vmem>>, vector<1x8x128xf32>
    %30 = vector.shape_cast %29 : vector<1x8x128xf32> to vector<8x128xf32>
    %cst_14 = arith.constant dense<0.000000e+00> : vector<8xf32>
    %31 = vector.multi_reduction <add>, %30, %cst_14 [1] : vector<8x128xf32> to vector<8xf32>
    %32 = vector.shape_cast %31 : vector<8xf32> to vector<8x1xf32>
    %cst_15 = arith.constant 3.125000e-02 : f32
    %33 = vector.broadcast %cst_15 : f32 to vector<8x1xf32>
    %34 = arith.mulf %32, %33 : vector<8x1xf32>
    %35 = vector.broadcast %34 : vector<8x1xf32> to vector<8x128xf32>
    %36 = arith.subf %30, %35 : vector<8x128xf32>
    %37 = tpu.iota {dimensions = array<i32: 1>} : vector<8x128xi32>
    %c32_i32_16 = arith.constant 32 : i32
    %38 = vector.broadcast %c32_i32_16 : i32 to vector<8x128xi32>
    %39 = arith.cmpi slt, %37, %38 : vector<8x128xi32>
    %cst_17 = arith.constant 0.000000e+00 : f32
    %40 = vector.broadcast %cst_17 : f32 to vector<8x128xf32>
    %41 = arith.select %39, %36, %40 : vector<8x128xi1>, vector<8x128xf32>
    %42 = arith.mulf %41, %41 : vector<8x128xf32>
    %cst_18 = arith.constant dense<0.000000e+00> : vector<8xf32>
    %43 = vector.multi_reduction <add>, %42, %cst_18 [1] : vector<8x128xf32> to vector<8xf32>
    %44 = vector.shape_cast %43 : vector<8xf32> to vector<8x1xf32>
    %cst_19 = arith.constant 3.125000e-02 : f32
    %45 = vector.broadcast %cst_19 : f32 to vector<8x1xf32>
    %46 = arith.mulf %44, %45 : vector<8x1xf32>
    %cst_20 = arith.constant 9.99999974E-6 : f32
    %47 = vector.broadcast %cst_20 : f32 to vector<8x1xf32>
    %48 = arith.addf %46, %47 : vector<8x1xf32>
    %49 = math.rsqrt %48 : vector<8x1xf32>
    %50 = vector.broadcast %49 : vector<8x1xf32> to vector<8x128xf32>
    %51 = arith.mulf %41, %50 : vector<8x128xf32>
    %52 = vector.broadcast %0 : vector<1x128xf32> to vector<8x128xf32>
    %53 = arith.mulf %51, %52 : vector<8x128xf32>
    %54 = vector.broadcast %1 : vector<1x128xf32> to vector<8x128xf32>
    %55 = arith.addf %53, %54 : vector<8x128xf32>
    %c0_21 = arith.constant 0 : index
    %c0_22 = arith.constant 0 : index
    %56 = vector.load %arg4[%c0_21, %c0_22] : memref<128x32xf32, #tpu.memory_space<vmem>>, vector<128x32xf32>
    %cst_23 = arith.constant dense<0.000000e+00> : vector<8x32xf32>
    %57 = tpu.matmul %28, %56, %cst_23 {dimension_numbers = #tpu.dot_dimension_numbers<[1], [0], [0], [1], [0, 0, 1, 1], [], []>} : vector<8x128xf32>, vector<128x32xf32>, vector<8x32xf32> -> vector<8x32xf32>
    %c0_24 = arith.constant 0 : index
    %c0_25 = arith.constant 0 : index
    %58 = vector.load %arg5[%c0_24, %c0_25] : memref<1x32xf32, #tpu.memory_space<vmem>>, vector<1x32xf32>
    %59 = vector.broadcast %58 : vector<1x32xf32> to vector<8x32xf32>
    %60 = arith.addf %57, %59 : vector<8x32xf32>
    %c0_26 = arith.constant 0 : index
    %c0_27 = arith.constant 0 : index
    %61 = vector.load %arg6[%c0_26, %c0_27] : memref<128x64xf32, #tpu.memory_space<vmem>>, vector<128x64xf32>
    %cst_28 = arith.constant dense<0.000000e+00> : vector<8x64xf32>
    %62 = tpu.matmul %55, %61, %cst_28 {dimension_numbers = #tpu.dot_dimension_numbers<[1], [0], [0], [1], [0, 0, 1, 1], [], []>} : vector<8x128xf32>, vector<128x64xf32>, vector<8x64xf32> -> vector<8x64xf32>
    %c0_29 = arith.constant 0 : index
    %c0_30 = arith.constant 0 : index
    %63 = vector.load %arg7[%c0_29, %c0_30] : memref<1x64xf32, #tpu.memory_space<vmem>>, vector<1x64xf32>
    %64 = vector.broadcast %63 : vector<1x64xf32> to vector<8x64xf32>
    %65 = arith.addf %62, %64 : vector<8x64xf32>
    %66 = vector.extract_strided_slice %65 {offsets = [0, 0], sizes = [8, 32], strides = [1, 1]} : vector<8x64xf32> to vector<8x32xf32>
    %67 = vector.extract_strided_slice %65 {offsets = [0, 32], sizes = [8, 32], strides = [1, 1]} : vector<8x64xf32> to vector<8x32xf32>
    %68 = tpu.iota {dimensions = array<i32: 0>} : vector<8x8xi32>
    %c8_i32 = arith.constant 8 : i32
    %69 = arith.muli %arg1, %c8_i32 : i32
    %70 = vector.broadcast %69 : i32 to vector<8x8xi32>
    %71 = arith.addi %68, %70 : vector<8x8xi32>
    %72 = tpu.iota {dimensions = array<i32: 1>} : vector<8x8xi32>
    %c8_i32_31 = arith.constant 8 : i32
    %73 = vector.broadcast %c8_i32_31 : i32 to vector<8x8xi32>
    %74 = arith.cmpi slt, %72, %73 : vector<8x8xi32>
    %75 = arith.cmpi sge, %71, %72 : vector<8x8xi32>
    %76 = arith.andi %74, %75 : vector<8x8xi1>
    %77 = vector.extract_strided_slice %60 {offsets = [0, 0], sizes = [8, 8], strides = [1, 1]} : vector<8x32xf32> to vector<8x8xf32>
    %78 = vector.extract_strided_slice %66 {offsets = [0, 0], sizes = [8, 8], strides = [1, 1]} : vector<8x32xf32> to vector<8x8xf32>
    %79 = vector.extract_strided_slice %67 {offsets = [0, 0], sizes = [8, 8], strides = [1, 1]} : vector<8x32xf32> to vector<8x8xf32>
    %cst_32 = arith.constant dense<0.000000e+00> : vector<8x8xf32>
    %80 = tpu.matmul %77, %78, %cst_32 {dimension_numbers = #tpu.dot_dimension_numbers<[1], [1], [0], [0], [0, 0, 1, 0], [], []>} : vector<8x8xf32>, vector<8x8xf32>, vector<8x8xf32> -> vector<8x8xf32>
    %cst_33 = arith.constant 0.353553385 : f32
    %81 = vector.broadcast %cst_33 : f32 to vector<8x8xf32>
    %82 = arith.mulf %80, %81 : vector<8x8xf32>
    %cst_34 = arith.constant 0xFF800000 : f32
    %83 = vector.broadcast %cst_34 : f32 to vector<8x8xf32>
    %84 = arith.select %76, %82, %83 : vector<8x8xi1>, vector<8x8xf32>
    %cst_35 = arith.constant dense<0xFF800000> : vector<8xf32>
    %85 = vector.multi_reduction <maximumf>, %84, %cst_35 [1] : vector<8x8xf32> to vector<8xf32>
    %86 = vector.shape_cast %85 : vector<8xf32> to vector<8x1xf32>
    %87 = vector.broadcast %86 : vector<8x1xf32> to vector<8x8xf32>
    %88 = arith.subf %84, %87 : vector<8x8xf32>
    %89 = math.exp %88 : vector<8x8xf32>
    %cst_36 = arith.constant dense<0.000000e+00> : vector<8xf32>
    %90 = vector.multi_reduction <add>, %89, %cst_36 [1] : vector<8x8xf32> to vector<8xf32>
    %91 = vector.shape_cast %90 : vector<8xf32> to vector<8x1xf32>
    %92 = tpu.reciprocal %91 {approx = true} : vector<8x1xf32> -> vector<8x1xf32>
    %93 = arith.mulf %91, %92 : vector<8x1xf32>
    %cst_37 = arith.constant 2.000000e+00 : f32
    %94 = vector.broadcast %cst_37 : f32 to vector<8x1xf32>
    %95 = arith.subf %94, %93 : vector<8x1xf32>
    %96 = arith.mulf %92, %95 : vector<8x1xf32>
    %97 = vector.broadcast %96 : vector<8x1xf32> to vector<8x8xf32>
    %98 = arith.mulf %89, %97 : vector<8x8xf32>
    %cst_38 = arith.constant dense<0.000000e+00> : vector<8x8xf32>
    %99 = tpu.matmul %98, %79, %cst_38 {dimension_numbers = #tpu.dot_dimension_numbers<[1], [0], [0], [1], [0, 0, 1, 1], [], []>} : vector<8x8xf32>, vector<8x8xf32>, vector<8x8xf32> -> vector<8x8xf32>
    %100 = vector.extract_strided_slice %60 {offsets = [0, 8], sizes = [8, 8], strides = [1, 1]} : vector<8x32xf32> to vector<8x8xf32>
    %101 = vector.extract_strided_slice %66 {offsets = [0, 8], sizes = [8, 8], strides = [1, 1]} : vector<8x32xf32> to vector<8x8xf32>
    %102 = vector.extract_strided_slice %67 {offsets = [0, 8], sizes = [8, 8], strides = [1, 1]} : vector<8x32xf32> to vector<8x8xf32>
    %cst_39 = arith.constant dense<0.000000e+00> : vector<8x8xf32>
    %103 = tpu.matmul %100, %101, %cst_39 {dimension_numbers = #tpu.dot_dimension_numbers<[1], [1], [0], [0], [0, 0, 1, 0], [], []>} : vector<8x8xf32>, vector<8x8xf32>, vector<8x8xf32> -> vector<8x8xf32>
    %cst_40 = arith.constant 0.353553385 : f32
    %104 = vector.broadcast %cst_40 : f32 to vector<8x8xf32>
    %105 = arith.mulf %103, %104 : vector<8x8xf32>
    %cst_41 = arith.constant 0xFF800000 : f32
    %106 = vector.broadcast %cst_41 : f32 to vector<8x8xf32>
    %107 = arith.select %76, %105, %106 : vector<8x8xi1>, vector<8x8xf32>
    %cst_42 = arith.constant dense<0xFF800000> : vector<8xf32>
    %108 = vector.multi_reduction <maximumf>, %107, %cst_42 [1] : vector<8x8xf32> to vector<8xf32>
    %109 = vector.shape_cast %108 : vector<8xf32> to vector<8x1xf32>
    %110 = vector.broadcast %109 : vector<8x1xf32> to vector<8x8xf32>
    %111 = arith.subf %107, %110 : vector<8x8xf32>
    %112 = math.exp %111 : vector<8x8xf32>
    %cst_43 = arith.constant dense<0.000000e+00> : vector<8xf32>
    %113 = vector.multi_reduction <add>, %112, %cst_43 [1] : vector<8x8xf32> to vector<8xf32>
    %114 = vector.shape_cast %113 : vector<8xf32> to vector<8x1xf32>
    %115 = tpu.reciprocal %114 {approx = true} : vector<8x1xf32> -> vector<8x1xf32>
    %116 = arith.mulf %114, %115 : vector<8x1xf32>
    %cst_44 = arith.constant 2.000000e+00 : f32
    %117 = vector.broadcast %cst_44 : f32 to vector<8x1xf32>
    %118 = arith.subf %117, %116 : vector<8x1xf32>
    %119 = arith.mulf %115, %118 : vector<8x1xf32>
    %120 = vector.broadcast %119 : vector<8x1xf32> to vector<8x8xf32>
    %121 = arith.mulf %112, %120 : vector<8x8xf32>
    %cst_45 = arith.constant dense<0.000000e+00> : vector<8x8xf32>
    %122 = tpu.matmul %121, %102, %cst_45 {dimension_numbers = #tpu.dot_dimension_numbers<[1], [0], [0], [1], [0, 0, 1, 1], [], []>} : vector<8x8xf32>, vector<8x8xf32>, vector<8x8xf32> -> vector<8x8xf32>
    %123 = vector.extract_strided_slice %60 {offsets = [0, 16], sizes = [8, 8], strides = [1, 1]} : vector<8x32xf32> to vector<8x8xf32>
    %124 = vector.extract_strided_slice %66 {offsets = [0, 16], sizes = [8, 8], strides = [1, 1]} : vector<8x32xf32> to vector<8x8xf32>
    %125 = vector.extract_strided_slice %67 {offsets = [0, 16], sizes = [8, 8], strides = [1, 1]} : vector<8x32xf32> to vector<8x8xf32>
    %cst_46 = arith.constant dense<0.000000e+00> : vector<8x8xf32>
    %126 = tpu.matmul %123, %124, %cst_46 {dimension_numbers = #tpu.dot_dimension_numbers<[1], [1], [0], [0], [0, 0, 1, 0], [], []>} : vector<8x8xf32>, vector<8x8xf32>, vector<8x8xf32> -> vector<8x8xf32>
    %cst_47 = arith.constant 0.353553385 : f32
    %127 = vector.broadcast %cst_47 : f32 to vector<8x8xf32>
    %128 = arith.mulf %126, %127 : vector<8x8xf32>
    %cst_48 = arith.constant 0xFF800000 : f32
    %129 = vector.broadcast %cst_48 : f32 to vector<8x8xf32>
    %130 = arith.select %76, %128, %129 : vector<8x8xi1>, vector<8x8xf32>
    %cst_49 = arith.constant dense<0xFF800000> : vector<8xf32>
    %131 = vector.multi_reduction <maximumf>, %130, %cst_49 [1] : vector<8x8xf32> to vector<8xf32>
    %132 = vector.shape_cast %131 : vector<8xf32> to vector<8x1xf32>
    %133 = vector.broadcast %132 : vector<8x1xf32> to vector<8x8xf32>
    %134 = arith.subf %130, %133 : vector<8x8xf32>
    %135 = math.exp %134 : vector<8x8xf32>
    %cst_50 = arith.constant dense<0.000000e+00> : vector<8xf32>
    %136 = vector.multi_reduction <add>, %135, %cst_50 [1] : vector<8x8xf32> to vector<8xf32>
    %137 = vector.shape_cast %136 : vector<8xf32> to vector<8x1xf32>
    %138 = tpu.reciprocal %137 {approx = true} : vector<8x1xf32> -> vector<8x1xf32>
    %139 = arith.mulf %137, %138 : vector<8x1xf32>
    %cst_51 = arith.constant 2.000000e+00 : f32
    %140 = vector.broadcast %cst_51 : f32 to vector<8x1xf32>
    %141 = arith.subf %140, %139 : vector<8x1xf32>
    %142 = arith.mulf %138, %141 : vector<8x1xf32>
    %143 = vector.broadcast %142 : vector<8x1xf32> to vector<8x8xf32>
    %144 = arith.mulf %135, %143 : vector<8x8xf32>
    %cst_52 = arith.constant dense<0.000000e+00> : vector<8x8xf32>
    %145 = tpu.matmul %144, %125, %cst_52 {dimension_numbers = #tpu.dot_dimension_numbers<[1], [0], [0], [1], [0, 0, 1, 1], [], []>} : vector<8x8xf32>, vector<8x8xf32>, vector<8x8xf32> -> vector<8x8xf32>
    %146 = vector.extract_strided_slice %60 {offsets = [0, 24], sizes = [8, 8], strides = [1, 1]} : vector<8x32xf32> to vector<8x8xf32>
    %147 = vector.extract_strided_slice %66 {offsets = [0, 24], sizes = [8, 8], strides = [1, 1]} : vector<8x32xf32> to vector<8x8xf32>
    %148 = vector.extract_strided_slice %67 {offsets = [0, 24], sizes = [8, 8], strides = [1, 1]} : vector<8x32xf32> to vector<8x8xf32>
    %cst_53 = arith.constant dense<0.000000e+00> : vector<8x8xf32>
    %149 = tpu.matmul %146, %147, %cst_53 {dimension_numbers = #tpu.dot_dimension_numbers<[1], [1], [0], [0], [0, 0, 1, 0], [], []>} : vector<8x8xf32>, vector<8x8xf32>, vector<8x8xf32> -> vector<8x8xf32>
    %cst_54 = arith.constant 0.353553385 : f32
    %150 = vector.broadcast %cst_54 : f32 to vector<8x8xf32>
    %151 = arith.mulf %149, %150 : vector<8x8xf32>
    %cst_55 = arith.constant 0xFF800000 : f32
    %152 = vector.broadcast %cst_55 : f32 to vector<8x8xf32>
    %153 = arith.select %76, %151, %152 : vector<8x8xi1>, vector<8x8xf32>
    %cst_56 = arith.constant dense<0xFF800000> : vector<8xf32>
    %154 = vector.multi_reduction <maximumf>, %153, %cst_56 [1] : vector<8x8xf32> to vector<8xf32>
    %155 = vector.shape_cast %154 : vector<8xf32> to vector<8x1xf32>
    %156 = vector.broadcast %155 : vector<8x1xf32> to vector<8x8xf32>
    %157 = arith.subf %153, %156 : vector<8x8xf32>
    %158 = math.exp %157 : vector<8x8xf32>
    %cst_57 = arith.constant dense<0.000000e+00> : vector<8xf32>
    %159 = vector.multi_reduction <add>, %158, %cst_57 [1] : vector<8x8xf32> to vector<8xf32>
    %160 = vector.shape_cast %159 : vector<8xf32> to vector<8x1xf32>
    %161 = tpu.reciprocal %160 {approx = true} : vector<8x1xf32> -> vector<8x1xf32>
    %162 = arith.mulf %160, %161 : vector<8x1xf32>
    %cst_58 = arith.constant 2.000000e+00 : f32
    %163 = vector.broadcast %cst_58 : f32 to vector<8x1xf32>
    %164 = arith.subf %163, %162 : vector<8x1xf32>
    %165 = arith.mulf %161, %164 : vector<8x1xf32>
    %166 = vector.broadcast %165 : vector<8x1xf32> to vector<8x8xf32>
    %167 = arith.mulf %158, %166 : vector<8x8xf32>
    %cst_59 = arith.constant dense<0.000000e+00> : vector<8x8xf32>
    %168 = tpu.matmul %167, %148, %cst_59 {dimension_numbers = #tpu.dot_dimension_numbers<[1], [0], [0], [1], [0, 0, 1, 1], [], []>} : vector<8x8xf32>, vector<8x8xf32>, vector<8x8xf32> -> vector<8x8xf32>
    %169 = tpu.concatenate %99, %122, %145, %168 in 1 : vector<8x8xf32>, vector<8x8xf32>, vector<8x8xf32>, vector<8x8xf32> -> vector<8x32xf32>
    %c0_60 = arith.constant 0 : index
    %c0_61 = arith.constant 0 : index
    %170 = vector.load %arg8[%c0_60, %c0_61] : memref<32x128xf32, #tpu.memory_space<vmem>>, vector<32x128xf32>
    %cst_62 = arith.constant dense<0.000000e+00> : vector<8x128xf32>
    %171 = tpu.matmul %169, %170, %cst_62 {dimension_numbers = #tpu.dot_dimension_numbers<[1], [0], [0], [1], [0, 0, 1, 1], [], []>} : vector<8x32xf32>, vector<32x128xf32>, vector<8x128xf32> -> vector<8x128xf32>
    %c0_63 = arith.constant 0 : index
    %c0_64 = arith.constant 0 : index
    %172 = vector.load %arg9[%c0_63, %c0_64] : memref<1x128xf32, #tpu.memory_space<vmem>>, vector<1x128xf32>
    %173 = vector.broadcast %172 : vector<1x128xf32> to vector<8x128xf32>
    %174 = arith.addf %171, %173 : vector<8x128xf32>
    %175 = arith.addf %3, %174 : vector<8x128xf32>
    %c0_65 = arith.constant 0 : index
    %c0_66 = arith.constant 0 : index
    %c0_67 = arith.constant 0 : index
    %176 = vector.load %arg12[%c0_65, %c0_66, %c0_67] : memref<1x8x128xf32, #tpu.memory_space<vmem>>, vector<1x8x128xf32>
    %177 = vector.shape_cast %176 : vector<1x8x128xf32> to vector<8x128xf32>
    %178 = vector.shape_cast %175 : vector<8x128xf32> to vector<1x8x128xf32>
    tpu.vector_store %arg12[%c0_65, %c0_66, %c0_67], %178 {strides = array<i32>} : memref<1x8x128xf32, #tpu.memory_space<vmem>>, vector<1x8x128xf32>,
    return
  }
  func.func @transform_0(%arg0: i32, %arg1: i32) -> (i32, i32, i32) {
    %c0_i32 = arith.constant 0 : i32
    %c0_i32_0 = arith.constant 0 : i32
    return %arg0, %arg1, %c0_i32 : i32, i32, i32
  }
  func.func @transform_1(%arg0: i32, %arg1: i32) -> (i32, i32, i32) {
    %c0_i32 = arith.constant 0 : i32
    %c0_i32_0 = arith.constant 0 : i32
    %c0_i32_1 = arith.constant 0 : i32
    return %arg0, %c0_i32, %c0_i32_0 : i32, i32, i32
  }
  func.func @transform_2(%arg0: i32, %arg1: i32) -> (i32, i32) {
    %c0_i32 = arith.constant 0 : i32
    %c0_i32_0 = arith.constant 0 : i32
    %c0_i32_1 = arith.constant 0 : i32
    return %c0_i32, %c0_i32_0 : i32, i32
  }
  func.func @transform_3(%arg0: i32, %arg1: i32) -> (i32, i32) {
    %c0_i32 = arith.constant 0 : i32
    %c0_i32_0 = arith.constant 0 : i32
    %c0_i32_1 = arith.constant 0 : i32
    return %c0_i32, %c0_i32_0 : i32, i32
  }
  func.func @transform_4(%arg0: i32, %arg1: i32) -> (i32, i32) {
    %c0_i32 = arith.constant 0 : i32
    %c0_i32_0 = arith.constant 0 : i32
    %c0_i32_1 = arith.constant 0 : i32
    return %c0_i32, %c0_i32_0 : i32, i32
  }
  func.func @transform_5(%arg0: i32, %arg1: i32) -> (i32, i32) {
    %c0_i32 = arith.constant 0 : i32
    %c0_i32_0 = arith.constant 0 : i32
    %c0_i32_1 = arith.constant 0 : i32
    return %c0_i32, %c0_i32_0 : i32, i32
  }
  func.func @transform_6(%arg0: i32, %arg1: i32) -> (i32, i32) {
    %c0_i32 = arith.constant 0 : i32
    %c0_i32_0 = arith.constant 0 : i32
    %c0_i32_1 = arith.constant 0 : i32
    return %c0_i32, %c0_i32_0 : i32, i32
  }
  func.func @transform_7(%arg0: i32, %arg1: i32) -> (i32, i32) {
    %c0_i32 = arith.constant 0 : i32
    %c0_i32_0 = arith.constant 0 : i32
    %c0_i32_1 = arith.constant 0 : i32
    return %c0_i32, %c0_i32_0 : i32, i32
  }
  func.func @transform_8(%arg0: i32, %arg1: i32) -> (i32, i32) {
    %c0_i32 = arith.constant 0 : i32
    %c0_i32_0 = arith.constant 0 : i32
    %c0_i32_1 = arith.constant 0 : i32
    return %c0_i32, %c0_i32_0 : i32, i32
  }
  func.func @transform_9(%arg0: i32, %arg1: i32) -> (i32, i32) {
    %c0_i32 = arith.constant 0 : i32
    %c0_i32_0 = arith.constant 0 : i32
    %c0_i32_1 = arith.constant 0 : i32
    return %c0_i32, %c0_i32_0 : i32, i32
  }
  func.func @transform_10(%arg0: i32, %arg1: i32) -> (i32, i32, i32) {
    %c0_i32 = arith.constant 0 : i32
    %c0_i32_0 = arith.constant 0 : i32
    return %arg0, %arg1, %c0_i32 : i32, i32, i32
  }
}

module attributes {stable_mosaic.version = 11 : i64} {
  func.func @ffn_ln_kernel(%arg0: i32, %arg1: i32, %arg2: memref<16x128xf32, #tpu.memory_space<vmem>>, %arg3: memref<128x128xf32, #tpu.memory_space<vmem>>, %arg4: memref<1x128xf32, #tpu.memory_space<vmem>>, %arg5: memref<128x128xf32, #tpu.memory_space<vmem>>, %arg6: memref<1x128xf32, #tpu.memory_space<vmem>>, %arg7: memref<1x128xf32, #tpu.memory_space<vmem>>, %arg8: memref<1x128xf32, #tpu.memory_space<vmem>>, %arg9: memref<16x128xf32, #tpu.memory_space<vmem>>, %arg10: memref<16x128xf32, #tpu.memory_space<vmem>>, %arg11: memref<16x128xf32, #tpu.memory_space<vmem>>) attributes {dimension_semantics = [#tpu.dimension_semantics<parallel>, #tpu.dimension_semantics<arbitrary>], iteration_bounds = array<i64: 1, 1>, scalar_prefetch = 0 : i64, scratch_operands = 2 : i64, tpu.core_type = #tpu.core_type<tc>, window_params = [{transform_indices = @transform_0, window_bounds = array<i64: 16, 128>}, {transform_indices = @transform_1, window_bounds = array<i64: 128, 128>}, {transform_indices = @transform_2, window_bounds = array<i64: 1, 128>}, {transform_indices = @transform_3, window_bounds = array<i64: 128, 128>}, {pipeline_mode = #tpu.pipeline_mode<synchronous>, transform_indices = @transform_4, window_bounds = array<i64: 1, 128>}, {pipeline_mode = #tpu.pipeline_mode<synchronous>, transform_indices = @transform_5, window_bounds = array<i64: 1, 128>}, {pipeline_mode = #tpu.pipeline_mode<synchronous>, transform_indices = @transform_6, window_bounds = array<i64: 1, 128>}, {transform_indices = @transform_7, window_bounds = array<i64: 16, 128>}]} {
    %c0_i32 = arith.constant 0 : i32
    %0 = arith.cmpi eq, %arg1, %c0_i32 : i32
    %1 = arith.extui %0 : i1 to i32
    %c0_i32_0 = arith.constant 0 : i32
    %2 = arith.cmpi ne, %1, %c0_i32_0 : i32
    scf.if %2 {
      %c0_16 = arith.constant 0 : index
      %c0_17 = arith.constant 0 : index
      %19 = vector.load %arg2[%c0_16, %c0_17] : memref<16x128xf32, #tpu.memory_space<vmem>>, vector<16x128xf32>
      %c0_18 = arith.constant 0 : index
      %c0_19 = arith.constant 0 : index
      %20 = vector.load %arg7[%c0_18, %c0_19] : memref<1x128xf32, #tpu.memory_space<vmem>>, vector<1x128xf32>
      %c0_20 = arith.constant 0 : index
      %c0_21 = arith.constant 0 : index
      %21 = vector.load %arg8[%c0_20, %c0_21] : memref<1x128xf32, #tpu.memory_space<vmem>>, vector<1x128xf32>
      %cst_22 = arith.constant dense<0.000000e+00> : vector<16xf32>
      %22 = vector.multi_reduction <add>, %19, %cst_22 [1] : vector<16x128xf32> to vector<16xf32>
      %23 = vector.shape_cast %22 : vector<16xf32> to vector<16x1xf32>
      %cst_23 = arith.constant 3.125000e-02 : f32
      %24 = vector.broadcast %cst_23 : f32 to vector<16x1xf32>
      %25 = arith.mulf %23, %24 : vector<16x1xf32>
      %26 = vector.broadcast %25 : vector<16x1xf32> to vector<16x128xf32>
      %27 = arith.subf %19, %26 : vector<16x128xf32>
      %28 = tpu.iota {dimensions = array<i32: 1>} : vector<16x128xi32>
      %c32_i32 = arith.constant 32 : i32
      %29 = vector.broadcast %c32_i32 : i32 to vector<16x128xi32>
      %30 = arith.cmpi slt, %28, %29 : vector<16x128xi32>
      %cst_24 = arith.constant 0.000000e+00 : f32
      %31 = vector.broadcast %cst_24 : f32 to vector<16x128xf32>
      %32 = arith.select %30, %27, %31 : vector<16x128xi1>, vector<16x128xf32>
      %33 = arith.mulf %32, %32 : vector<16x128xf32>
      %cst_25 = arith.constant dense<0.000000e+00> : vector<16xf32>
      %34 = vector.multi_reduction <add>, %33, %cst_25 [1] : vector<16x128xf32> to vector<16xf32>
      %35 = vector.shape_cast %34 : vector<16xf32> to vector<16x1xf32>
      %cst_26 = arith.constant 3.125000e-02 : f32
      %36 = vector.broadcast %cst_26 : f32 to vector<16x1xf32>
      %37 = arith.mulf %35, %36 : vector<16x1xf32>
      %cst_27 = arith.constant 9.99999974E-6 : f32
      %38 = vector.broadcast %cst_27 : f32 to vector<16x1xf32>
      %39 = arith.addf %37, %38 : vector<16x1xf32>
      %40 = math.rsqrt %39 : vector<16x1xf32>
      %41 = vector.broadcast %40 : vector<16x1xf32> to vector<16x128xf32>
      %42 = arith.mulf %32, %41 : vector<16x128xf32>
      %43 = vector.broadcast %20 : vector<1x128xf32> to vector<16x128xf32>
      %44 = arith.mulf %42, %43 : vector<16x128xf32>
      %45 = vector.broadcast %21 : vector<1x128xf32> to vector<16x128xf32>
      %46 = arith.addf %44, %45 : vector<16x128xf32>
      %c0_28 = arith.constant 0 : index
      %c0_29 = arith.constant 0 : index
      %47 = vector.load %arg11[%c0_28, %c0_29] : memref<16x128xf32, #tpu.memory_space<vmem>>, vector<16x128xf32>
      tpu.vector_store %arg11[%c0_28, %c0_29], %46 {strides = array<i32>} : memref<16x128xf32, #tpu.memory_space<vmem>>, vector<16x128xf32>,
      %cst_30 = arith.constant 0.000000e+00 : f32
      %48 = vector.broadcast %cst_30 : f32 to vector<16x128xf32>
      %c0_31 = arith.constant 0 : index
      %c0_32 = arith.constant 0 : index
      %49 = vector.load %arg10[%c0_31, %c0_32] : memref<16x128xf32, #tpu.memory_space<vmem>>, vector<16x128xf32>
      tpu.vector_store %arg10[%c0_31, %c0_32], %48 {strides = array<i32>} : memref<16x128xf32, #tpu.memory_space<vmem>>, vector<16x128xf32>,
    } else {
    }
    %c0 = arith.constant 0 : index
    %c0_1 = arith.constant 0 : index
    %3 = vector.load %arg11[%c0, %c0_1] : memref<16x128xf32, #tpu.memory_space<vmem>>, vector<16x128xf32>
    %c0_2 = arith.constant 0 : index
    %c0_3 = arith.constant 0 : index
    %4 = vector.load %arg3[%c0_2, %c0_3] : memref<128x128xf32, #tpu.memory_space<vmem>>, vector<128x128xf32>
    %cst = arith.constant dense<0.000000e+00> : vector<16x128xf32>
    %5 = tpu.matmul %3, %4, %cst {dimension_numbers = #tpu.dot_dimension_numbers<[1], [0], [0], [1], [0, 0, 1, 1], [], []>} : vector<16x128xf32>, vector<128x128xf32>, vector<16x128xf32> -> vector<16x128xf32>
    %c0_4 = arith.constant 0 : index
    %c0_5 = arith.constant 0 : index
    %6 = vector.load %arg4[%c0_4, %c0_5] : memref<1x128xf32, #tpu.memory_space<vmem>>, vector<1x128xf32>
    %7 = vector.broadcast %6 : vector<1x128xf32> to vector<16x128xf32>
    %8 = arith.addf %5, %7 : vector<16x128xf32>
    %cst_6 = arith.constant 0.000000e+00 : f32
    %9 = vector.broadcast %cst_6 : f32 to vector<16x128xf32>
    %10 = arith.maximumf %8, %9 : vector<16x128xf32>
    %c0_7 = arith.constant 0 : index
    %c0_8 = arith.constant 0 : index
    %11 = vector.load %arg10[%c0_7, %c0_8] : memref<16x128xf32, #tpu.memory_space<vmem>>, vector<16x128xf32>
    %c0_9 = arith.constant 0 : index
    %c0_10 = arith.constant 0 : index
    %12 = vector.load %arg5[%c0_9, %c0_10] : memref<128x128xf32, #tpu.memory_space<vmem>>, vector<128x128xf32>
    %cst_11 = arith.constant dense<0.000000e+00> : vector<16x128xf32>
    %13 = tpu.matmul %10, %12, %cst_11 {dimension_numbers = #tpu.dot_dimension_numbers<[1], [0], [0], [1], [0, 0, 1, 1], [], []>} : vector<16x128xf32>, vector<128x128xf32>, vector<16x128xf32> -> vector<16x128xf32>
    %14 = arith.addf %11, %13 : vector<16x128xf32>
    %c0_12 = arith.constant 0 : index
    %c0_13 = arith.constant 0 : index
    %15 = vector.load %arg10[%c0_12, %c0_13] : memref<16x128xf32, #tpu.memory_space<vmem>>, vector<16x128xf32>
    tpu.vector_store %arg10[%c0_12, %c0_13], %14 {strides = array<i32>} : memref<16x128xf32, #tpu.memory_space<vmem>>, vector<16x128xf32>,
    %c0_i32_14 = arith.constant 0 : i32
    %16 = arith.cmpi eq, %arg1, %c0_i32_14 : i32
    %17 = arith.extui %16 : i1 to i32
    %c0_i32_15 = arith.constant 0 : i32
    %18 = arith.cmpi ne, %17, %c0_i32_15 : i32
    scf.if %18 {
      %c0_16 = arith.constant 0 : index
      %c0_17 = arith.constant 0 : index
      %19 = vector.load %arg10[%c0_16, %c0_17] : memref<16x128xf32, #tpu.memory_space<vmem>>, vector<16x128xf32>
      %c0_18 = arith.constant 0 : index
      %c0_19 = arith.constant 0 : index
      %20 = vector.load %arg6[%c0_18, %c0_19] : memref<1x128xf32, #tpu.memory_space<vmem>>, vector<1x128xf32>
      %21 = vector.broadcast %20 : vector<1x128xf32> to vector<16x128xf32>
      %22 = arith.addf %19, %21 : vector<16x128xf32>
      %c0_20 = arith.constant 0 : index
      %c0_21 = arith.constant 0 : index
      %23 = vector.load %arg2[%c0_20, %c0_21] : memref<16x128xf32, #tpu.memory_space<vmem>>, vector<16x128xf32>
      %24 = arith.addf %22, %23 : vector<16x128xf32>
      %c0_22 = arith.constant 0 : index
      %c0_23 = arith.constant 0 : index
      %25 = vector.load %arg9[%c0_22, %c0_23] : memref<16x128xf32, #tpu.memory_space<vmem>>, vector<16x128xf32>
      tpu.vector_store %arg9[%c0_22, %c0_23], %24 {strides = array<i32>} : memref<16x128xf32, #tpu.memory_space<vmem>>, vector<16x128xf32>,
    } else {
    }
    return
  }
  func.func @transform_0(%arg0: i32, %arg1: i32) -> (i32, i32) {
    %c0_i32 = arith.constant 0 : i32
    %c0_i32_0 = arith.constant 0 : i32
    return %arg0, %c0_i32 : i32, i32
  }
  func.func @transform_1(%arg0: i32, %arg1: i32) -> (i32, i32) {
    %c0_i32 = arith.constant 0 : i32
    %c0_i32_0 = arith.constant 0 : i32
    return %c0_i32, %arg1 : i32, i32
  }
  func.func @transform_2(%arg0: i32, %arg1: i32) -> (i32, i32) {
    %c0_i32 = arith.constant 0 : i32
    %c0_i32_0 = arith.constant 0 : i32
    return %c0_i32, %arg1 : i32, i32
  }
  func.func @transform_3(%arg0: i32, %arg1: i32) -> (i32, i32) {
    %c0_i32 = arith.constant 0 : i32
    %c0_i32_0 = arith.constant 0 : i32
    return %arg1, %c0_i32 : i32, i32
  }
  func.func @transform_4(%arg0: i32, %arg1: i32) -> (i32, i32) {
    %c0_i32 = arith.constant 0 : i32
    %c0_i32_0 = arith.constant 0 : i32
    %c0_i32_1 = arith.constant 0 : i32
    return %c0_i32, %c0_i32_0 : i32, i32
  }
  func.func @transform_5(%arg0: i32, %arg1: i32) -> (i32, i32) {
    %c0_i32 = arith.constant 0 : i32
    %c0_i32_0 = arith.constant 0 : i32
    %c0_i32_1 = arith.constant 0 : i32
    return %c0_i32, %c0_i32_0 : i32, i32
  }
  func.func @transform_6(%arg0: i32, %arg1: i32) -> (i32, i32) {
    %c0_i32 = arith.constant 0 : i32
    %c0_i32_0 = arith.constant 0 : i32
    %c0_i32_1 = arith.constant 0 : i32
    return %c0_i32, %c0_i32_0 : i32, i32
  }
  func.func @transform_7(%arg0: i32, %arg1: i32) -> (i32, i32) {
    %c0_i32 = arith.constant 0 : i32
    %c0_i32_0 = arith.constant 0 : i32
    return %arg0, %c0_i32 : i32, i32
  }
}

</mosaic_0001>

<bundles_post_ra>
// kernel: only_decoder_block_forward.3
= control target key start
LH: loop header
LB: loop body
LE: loop exit
PB: predicated region body
PF: predicated region fallthrough
CT: control target
= control target key end

     0   :  { %s711_s0 = inlined_call_operand.vmem [shape: f32[16,128], index: 0, kind: input, shape index: {}]   ;;  %s712_s1 = inlined_call_operand.vmem [shape: f32[128,128], index: 1, kind: input, shape index: {}]   ;;  %s713_s2 = inlined_call_operand.vmem [shape: f32[1,128], index: 2, kind: input, shape index: {}]   ;;  %s714_s3 = inlined_call_operand.vmem [shape: f32[128,128], index: 3, kind: input, shape index: {}]   ;;  %s715_s4 = inlined_call_operand.vmem [shape: f32[1,128], index: 4, kind: input, shape index: {}]   ;;  %s716_s5 = inlined_call_operand.vmem [shape: f32[1,128], index: 5, kind: input, shape index: {}]   ;;  %s717_s6 = inlined_call_operand.vmem [shape: f32[1,128], index: 6, kind: input, shape index: {}]   ;;  %s718_s7 = inlined_call_operand.hbm [shape: f32[16,128], index: 7, kind: output, shape index: {}]  }
   0x1   :  { %v568_v0 = vld [vmem:[%s711_s0] sm:$0xff] }
   0x2   :  { %12 = vsyncpa [#allocation5], 0  ;;  %35 = vadd.xlane.f32.xlu0 %v568_v0  ;;  %v574_v1 = vld [vmem:[%s711_s0 + $0x8] sm:$0xff]  ;;  %v84_v2 = vld [vmem:[%s712_s1] sm:$0xff]  ;;  %v43_v8 = vlaneseq }
   0x3   :  { %v85_v3 = vld [vmem:[%s712_s1 + $0x8] sm:$0xff]  ;;  %v86_v4 = vld [vmem:[%s712_s1 + $0x10] sm:$0xff]  ;;  %v87_v6 = vld [vmem:[%s712_s1 + $0x18] sm:$0xff] }
   0x4   :  { %v427_v5 = vpack.c.bf16 %v85_v3, %v84_v2  ;;  %v431_v7 = vpack.c.bf16 %v87_v6, %v86_v4  ;;  %v44_v9 = vand.u32 127, %v43_v8  ;;  %v88_v20 = vld [vmem:[%s712_s1 + $0x20] sm:$0xff]  ;;  %v89_v21 = vld [vmem:[%s712_s1 + $0x28] sm:$0xff]  ;;  %v90_v23 = vld [vmem:[%s712_s1 + $0x30] sm:$0xff] }
   0x5   :  { %v435_v22 = vpack.c.bf16 %v89_v21, %v88_v20  ;;  %v91_v24 = vld [vmem:[%s712_s1 + $0x38] sm:$0xff]  ;;  %v92_v26 = vld [vmem:[%s712_s1 + $0x40] sm:$0xff]  ;;  %v93_v27 = vld [vmem:[%s712_s1 + $0x48] sm:$0xff] }
   0x6   :  { %37 = vadd.xlane.f32.xlu0 %v574_v1  ;;  %428 = vmatprep.subr.bf16.mxu0 %v427_v5  ;;  %vm45_vm0 = vcmp.lt.s32.totalorder %v44_v9, 32  ;;  %v439_v25 = vpack.c.bf16 %v91_v24, %v90_v23  ;;  %v443_v28 = vpack.c.bf16 %v93_v27, %v92_v26  ;;  %v94_v29 = vld [vmem:[%s712_s1 + $0x50] sm:$0xff]  ;;  %v95_v30 = vld [vmem:[%s712_s1 + $0x58] sm:$0xff]  ;;  %v96_v31 = vld [vmem:[%s712_s1 + $0x60] sm:$0xff] }
   0x7   :  { %430 = vmatpush3.bf16.msra.mxu0 %v427_v5  ;;  %v447_v32 = vpack.c.bf16 %v95_v30, %v94_v29  ;;  %v97_v33 = vld [vmem:[%s712_s1 + $0x68] sm:$0xff]  ;;  %v98_v35 = vld [vmem:[%s712_s1 + $0x70] sm:$0xff]  ;;  %v99_v36 = vld [vmem:[%s712_s1 + $0x78] sm:$0xff] }
   0x8   :  { %432 = vmatprep.subr.bf16.mxu0 %v431_v7  ;;  %v451_v34 = vpack.c.bf16 %v97_v33, %v96_v31  ;;  %v455_v37 = vpack.c.bf16 %v99_v36, %v98_v35  ;;  %v186_v38 = vld [vmem:[%s714_s3] sm:$0xff]  ;;  %v187_v39 = vld [vmem:[%s714_s3 + $0x8] sm:$0xff]  ;;  %v188_v40 = vld [vmem:[%s714_s3 + $0x10] sm:$0xff] }
   0x9   :  { %v459_v41 = vpack.c.bf16 %v187_v39, %v186_v38  ;;  %v189_v42 = vld [vmem:[%s714_s3 + $0x18] sm:$0xff]  ;;  %v190_v44 = vld [vmem:[%s714_s3 + $0x20] sm:$0xff]  ;;  %v191_v45 = vld [vmem:[%s714_s3 + $0x28] sm:$0xff] }
   0xa   :  { %v463_v43 = vpack.c.bf16 %v189_v42, %v188_v40  ;;  %v467_v46 = vpack.c.bf16 %v191_v45, %v190_v44  ;;  %v192_v47 = vld [vmem:[%s714_s3 + $0x30] sm:$0xff]  ;;  %v193_v48 = vld [vmem:[%s714_s3 + $0x38] sm:$0xff]  ;;  %v194_v50 = vld [vmem:[%s714_s3 + $0x40] sm:$0xff] }
   0xb   :  { %434 = vmatpush3.bf16.msra.mxu0 %v431_v7  ;;  %460 = vmatprep.subr.bf16.mxu1 %v459_v41  ;;  %v471_v49 = vpack.c.bf16 %v193_v48, %v192_v47  ;;  %v195_v51 = vld [vmem:[%s714_s3 + $0x48] sm:$0xff]  ;;  %v196_v53 = vld [vmem:[%s714_s3 + $0x50] sm:$0xff]  ;;  %v197_v54 = vld [vmem:[%s714_s3 + $0x58] sm:$0xff] }
   0xc   :  { %436 = vmatprep.subr.bf16.mxu0 %v435_v22  ;;  %462 = vmatpush3.bf16.msra.mxu1 %v459_v41  ;;  %v475_v52 = vpack.c.bf16 %v195_v51, %v194_v50  ;;  %v479_v55 = vpack.c.bf16 %v197_v54, %v196_v53  ;;  %v198_v56 = vld [vmem:[%s714_s3 + $0x60] sm:$0xff]  ;;  %v199_v57 = vld [vmem:[%s714_s3 + $0x68] sm:$0xff] }
   0xd   :  { %464 = vmatprep.subr.bf16.mxu1 %v463_v43  ;;  %v483_v58 = vpack.c.bf16 %v199_v57, %v198_v56  ;;  %v317_v4 = vld [vmem:[%s716_s5] ss:$0 sm:$0xff] }
   0xe   :  { %v318_v6 = vld [vmem:[%s717_s6] ss:$0 sm:$0xff] }
   0xf   :  { %438 = vmatpush3.bf16.msra.mxu0 %v435_v22  ;;  %v320_v23 = vld [vmem:[%s715_s4] ss:$0 sm:$0xff] }
  0x10   :  { %440 = vmatprep.subr.bf16.mxu0 %v439_v25  ;;  %466 = vmatpush3.bf16.msra.mxu1 %v463_v43 }
  0x11   :  { %468 = vmatprep.subr.bf16.mxu1 %v467_v46 }
  0x13   :  { %442 = vmatpush3.bf16.msra.mxu0 %v439_v25 }
  0x14   :  { %444 = vmatprep.subr.bf16.mxu0 %v443_v28  ;;  %470 = vmatpush3.bf16.msra.mxu1 %v467_v46 }
  0x15   :  { %472 = vmatprep.subr.bf16.mxu1 %v471_v49 }
  0x17   :  { %446 = vmatpush3.bf16.msra.mxu0 %v443_v28 }
  0x18   :  { %448 = vmatprep.subr.bf16.mxu0 %v447_v32  ;;  %474 = vmatpush3.bf16.msra.mxu1 %v471_v49 }
  0x19   :  { %476 = vmatprep.subr.bf16.mxu1 %v475_v52 }
  0x1b   :  { %450 = vmatpush3.bf16.msra.mxu0 %v447_v32 }
  0x1c   :  { %452 = vmatprep.subr.bf16.mxu0 %v451_v34  ;;  %478 = vmatpush3.bf16.msra.mxu1 %v475_v52 }
  0x1d   :  { %480 = vmatprep.subr.bf16.mxu1 %v479_v55 }
  0x1f   :  { %454 = vmatpush3.bf16.msra.mxu0 %v451_v34 }
  0x20   :  { %456 = vmatprep.subr.bf16.mxu0 %v455_v37  ;;  %482 = vmatpush3.bf16.msra.mxu1 %v479_v55 }
  0x21   :  { %484 = vmatprep.subr.bf16.mxu1 %v483_v58 }
  0x23   :  { %458 = vmatpush3.bf16.msra.mxu0 %v455_v37 }
  0x24   :  { %486 = vmatpush3.bf16.msra.mxu1 %v483_v58 }
  0x8f   :  { %v36_v10 = vpop.xlane.xlu0 %35 }
  0x90   :  { %v39_v11 = vmul.f32 0.03125, %v36_v10 }
  0x92   :  { %v41_v12 = vsub.f32 %v568_v0, %v39_v11 }
  0x93   :  { %v38_v13 = vpop.xlane.xlu0 %37 }
  0x94   :  { %v40_v14 = vmul.f32 0.03125, %v38_v13  ;;  %v590_v15 = vsel %vm45_vm0, %v41_v12, 0.0  ;;  %v200_v13 = vld [vmem:[%s714_s3 + $0x70] sm:$0xff] }
  0x95   :  { %v48_v16 = vmul.f32 %v590_v15, %v590_v15 }
  0x96   :  { %v42_v17 = vsub.f32 %v574_v1, %v40_v14  ;;  %v201_v14 = vld [vmem:[%s714_s3 + $0x78] sm:$0xff]  ;;  %s522_s3 = smov [#allocation4]  }
  0x97   :  { %50 = vadd.xlane.f32.xlu1 %v48_v16  ;;  %v319_v16 = vld [vmem:[%s713_s2] ss:$0 sm:$0xff]  ;;  %s306_s24 = sshll.u32 %s522_s3, 4  ;;  %s307_s24 = int_to_ptr.vmem [resolvable:$true] %s306_s24 }
  0x98   :  { %v595_v18 = vsel %vm45_vm0, %v42_v17, 0.0  ;;  %s498_s2 = scalar_lea.vmem %s307_s24, 256  ;;  %p503_p1 = scmp.lt.s32.totalorder %s307_s24, %s307_s24 }
  0x99   :  { %v49_v19 = vmul.f32 %v595_v18, %v595_v18  ;;  %p499_p0 = scmp.ne.s32.totalorder %s307_s24, %s498_s2  ;;  %p504_p2 = scmp.lt.s32.totalorder %s498_s2, %s498_s2 }
  0x9b   :  { %52 = vadd.xlane.f32.xlu1 %v49_v19  ;;  %p505_p3 = por %p504_p2, %p503_p1 }
  0x9d   :  { %p506_p4 = pnand %p505_p3, %p499_p0 }
 0x124   :  { %v51_v59 = vpop.xlane.xlu1 %50 }
 0x125   :  { %v54_v60 = vmul.f32 0.03125, %v51_v59 }
 0x127   :  { %v56_v61 = vadd.f32 1e-05, %v54_v60 }
 0x128   :  { %v53_v62 = vpop.xlane.xlu1 %52 }
 0x129   :  { %494 = vrsqrt.f32 %v56_v61  ;;  %v55_v63 = vmul.f32 0.03125, %v53_v62 }
 0x12b   :  { %v57_v2 = vadd.f32 1e-05, %v55_v63 }
 0x12d   :  { %496 = vrsqrt.f32 %v57_v2 }
 0x133   :  { %v495_v3 = vpop.eup %494 }
 0x134   :  { %v60_v5 = vmul.f32 %v495_v3, %v590_v15  ;;  %v487_v15 = vpack.c.bf16 %v201_v14, %v200_v13 }
 0x136   :  { %v68_v7 = vmul.f32 %v317_v4, %v60_v5  ;;  %488 = vmatprep.subr.bf16.mxu1 %v487_v15 }
 0x137   :  { %v497_v8 = vpop.eup %496  ;;  %490 = vmatpush3.bf16.msra.mxu1 %v487_v15 }
 0x138   :  { %v61_v9 = vmul.f32 %v497_v8, %v595_v18  ;;  %v76_v10 = vadd.f32 %v318_v6, %v68_v7 }
 0x13a   :  { %v69_v11 = vmul.f32 %v317_v4, %v61_v9  ;;  %389 = vmatprep.mubr.f32.mxu0 %v76_v10 }
 0x13c   :  { %v77_v12 = vadd.f32 %v318_v6, %v69_v11 }
 0x13e   :  { %390 = vmatmul.mubr.f32.vlgmr.msra.gmra.mrb[0].mxu0 %v77_v12 }
 0x211   :  { %v391_v17 = vpop.f32.mrb[0].mxu0 }
 0x212   :  { %v179_v18 = vadd.f32 %v391_v17, %v319_v16  ;;  %v173_v19 = vpop.f32.mrb[1].mxu0 }
 0x213   :  { %v174_v20 = vadd.f32 %v319_v16, %v173_v19 }
 0x214   :  { %v183_v22 = vmax.f32 %v179_v18, 0.0 }
 0x215   :  { %v182_v21 = vmax.f32 %v174_v20, 0.0 }
 0x217   :  { %424 = vmatprep.mubr.f32.mxu1 %v182_v21 }
 0x218   :  { %425 = vmatmul.mubr.f32.vlgmr.msra.gmra.mrb[0].mxu1 %v183_v22 }
 0x2eb   :  { %v426_v24 = vpop.f32.mrb[0].mxu1 }
 0x2ec   :  { %v294_v25 = vadd.f32 %v426_v24, %v320_v23  ;;  %v268_v26 = vpop.f32.mrb[1].mxu1 }
 0x2ed   :  { %v293_v27 = vadd.f32 %v320_v23, %v268_v26 }
 0x2ee   :  { %v298_v28 = vadd.f32 %v294_v25, %v574_v1 }
 0x2ef   :  { %v297_v29 = vadd.f32 %v293_v27, %v568_v0 }
 0x2f0   :  { %300 = vst [vmem:[#allocation4 + $0x8] sm:$0xff] %v298_v28 }
 0x2f1   :  { %299 = vst [vmem:[#allocation4] sm:$0xff] %v297_v29 }
 0x2f2   :  { %509 = shalt.err (!%p506_p4)
}
 0x2f3   :  { %s510_s26 = scalar_lea.hbm %s718_s7, 256 }
 0x2f4   :  { %p511_p5 = scmp.ne.s32.totalorder %s718_s7, %s510_s26  ;;  %p514_p6 = scmp.lt.u32.totalorder %s510_s26, %s718_s7 }
 0x2f6   :  { %p516_p7 = pnand %p514_p6, %p511_p5 }
 0x2f8   :  { %519 = shalt.err (!%p516_p7)
}
 0x2f9   :  { %s523_s8 = smov 128   ;;  %s524_s9 = smov 8  }
 0x2fa   :  { %312 = dma.vmem_to_hbm [thread:$0]  %s307_s24, 256, %s718_s7, [#allocation5], %s523_s8, %s523_s8, %s524_s9  }
 0x2fb   :  { %520 = dma.done.wait [#allocation5], 256  }
 0x2fc   :  { %521 = vsyncadd [#allocation5], 4294967040 }
 0x2fd   :  { %316 = vsyncpa [#allocation5], 1 }

// kernel: only_decoder_block_forward.2
= control target key start
LH: loop header
LB: loop body
LE: loop exit
PB: predicated region body
PF: predicated region fallthrough
CT: control target
= control target key end

     0   :  { %s1920_s13 = smov 0   ;;  %s1922_s14 = smov 0   ;;  %s2197_s0 = inlined_call_operand.vmem [shape: f32[2,8,128], index: 0, kind: input, shape index: {}, may-alias: {0,1}]   ;;  %s2198_s1 = inlined_call_operand.vmem [shape: f32[2,8,128], index: 1, kind: input, shape index: {}, may-alias: {0,1}]   ;;  %s2199_s2 = inlined_call_operand.vmem [shape: f32[128,32], index: 2, kind: input, shape index: {}]   ;;  %s2200_s3 = inlined_call_operand.vmem [shape: f32[1,32], index: 3, kind: input, shape index: {}]   ;;  %s2201_s4 = inlined_call_operand.vmem [shape: f32[128,64], index: 4, kind: input, shape index: {}]   ;;  %s2202_s5 = inlined_call_operand.vmem [shape: f32[1,64], index: 5, kind: input, shape index: {}]   ;;  %s2203_s6 = inlined_call_operand.vmem [shape: f32[32,128], index: 6, kind: input, shape index: {}]   ;;  %s2204_s7 = inlined_call_operand.vmem [shape: f32[1,128], index: 7, kind: input, shape index: {}]   ;;  %s2205_s8 = inlined_call_operand.vmem [shape: f32[1,128], index: 8, kind: input, shape index: {}]   ;;  %s2206_s9 = inlined_call_operand.vmem [shape: f32[1,128], index: 9, kind: input, shape index: {}]   ;;  %s2207_s10 = inlined_call_operand.vmem [shape: f32[2,8,128], index: 10, kind: output, shape index: {}]  }
   0x1   :  { %s1924_s15 = smov 0  }
   0x2 LB: > { %s32_s16 = sadd.s32 1, %s1846_s14  ;;  %p1517_p0 = scmp.ge.s32.totalorder %s1850_s15, 1  ;;  %s1850_s15 = sphi %s1924_s15, %s20_s15   ;;  %s1846_s14 = sphi %s1922_s14, %s2211_s14   ;;  %s1842_s13 = sphi %s1920_s13, %s2210_s13  }
   0x3   : > { %p34_p1 = scmp.ge.s32.totalorder %s32_s16, 2  ;;  %p339_p2 = scmp.lt.s32.totalorder %s1850_s15, 3 }
   0x5   : > { %s2213_s16 = smov (%p34_p1, %s32_s16), 0  ;;  %p340_p3 = pnand %p1517_p0, %p339_p2 }
   0x6   : > { %p385_p4 = scmp.lt.s32.totalorder (!%p340_p3), %s1842_s13, 1  ;;  %v543_v2 = vld [vmem:[%s2201_s4] sm:$0xff] (!%p340_p3)  ;;  %v544_v3 = vld [vmem:[%s2201_s4 + $0x8] sm:$0xff] (!%p340_p3)  ;;  %v1852_v5 = vmov (!%p340_p3), 0.0|0.0   ;;  %v545_v8 = vld [vmem:[%s2201_s4 + $0x10] sm:$0xff] (!%p340_p3)  ;;  %v410_v18 = vlaneseq (!%p340_p3)  ;;  %vm1853_vm1 = vmmov (!%p340_p3), 0  }
   0x7   : > { %343 = sbr.rel (%p340_p3) target bundleno = 1800 (0x708), region = 60  ;;  %v450_v4 = vld [vmem:[%s2199_s2] sm:$0xff] (!%p340_p3)  ;;  %1741 = vmatprep.subr.bf16.mxu1 (!%p340_p3), %v1852_v5  ;;  %v1742_v6 = vpack.c.bf16 (!%p340_p3), %v544_v3, %v543_v2  ;;  %1717 = vmatprep.subr.bf16.mxu0 (!%p340_p3), %v1852_v5  ;;  %v451_v7 = vld [vmem:[%s2199_s2 + $0x8] sm:$0xff] (!%p340_p3)  ;;  %v546_v9 = vld [vmem:[%s2201_s4 + $0x18] sm:$0xff] (!%p340_p3)  ;;  %v1854_v52 = vmov (!%p340_p3), 0.0   ;;  %vm644_vm2 = vcmask (!%p340_p3), 64512  }
   0x8   : > { %v1718_v10 = vpack.c.bf16 (!%p340_p3), %v451_v7, %v450_v4  ;;  %v452_v11 = vld [vmem:[%s2199_s2 + $0x10] sm:$0xff] (!%p340_p3)  ;;  %v453_v12 = vld [vmem:[%s2199_s2 + $0x18] sm:$0xff] (!%p340_p3)  ;;  %v1745_v13 = vpack.c.bf16 (!%p340_p3), %v546_v9, %v545_v8  ;;  %v547_v15 = vld [vmem:[%s2201_s4 + $0x20] sm:$0xff] (!%p340_p3)  ;;  %v1989_v19 = vand.u32 (!%p340_p3), 127, %v410_v18  ;;  %1663 = vmatprep.mubr.msk.f32.mxu1 (!%p340_p3), %vm1853_vm1, %v1854_v52  ;;  %1628 = vmatprep.mubr.msk.f32.mxu0 (!%p340_p3), %vm1853_vm1, %v1854_v52  ;;  %s1855_s12 = smov (!%p340_p3), 120   ;;  %s1857_s18 = smov (!%p340_p3), 112  }
   0x9   : > { %1743 = vmatpush3.bf16.msra.mxu1 (!%p340_p3), %v1742_v6  ;;  %v1721_v14 = vpack.c.bf16 (!%p340_p3), %v453_v12, %v452_v11  ;;  %v548_v16 = vld [vmem:[%s2201_s4 + $0x28] sm:$0xff] (!%p340_p3)  ;;  %v454_v30 = vld [vmem:[%s2199_s2 + $0x20] sm:$0xff] (!%p340_p3)  ;;  %v549_v32 = vld [vmem:[%s2201_s4 + $0x30] sm:$0xff] (!%p340_p3)  ;;  %s1858_s19 = smov (!%p340_p3), 88   ;;  %s1860_s21 = smov (!%p340_p3), 96   ;;  %vm1336_vm6 = vcmask (!%p340_p3), 130048  }
   0xa   : > { %1744 = vmatprep.subr.bf16.mxu1 (!%p340_p3), %v1852_v5  ;;  %1719 = vmatpush3.bf16.msra.mxu0 (!%p340_p3), %v1718_v10  ;;  %v1748_v17 = vpack.c.bf16 (!%p340_p3), %v548_v16, %v547_v15  ;;  %vm412_vm0 = vcmp.lt.s32.totalorder (!%p340_p3), %v1989_v19, 32  ;;  %v455_v31 = vld [vmem:[%s2199_s2 + $0x28] sm:$0xff] (!%p340_p3)  ;;  %v550_v34 = vld [vmem:[%s2201_s4 + $0x38] sm:$0xff] (!%p340_p3)  ;;  %v456_v36 = vld [vmem:[%s2199_s2 + $0x30] sm:$0xff] (!%p340_p3)  ;;  %vm641_vm3 = vcmp.lt.s32.totalorder (!%p340_p3), %v1989_v19, 8  ;;  %s1861_s22 = smov (!%p340_p3), 72  }
   0xb   : > { %1720 = vmatprep.subr.bf16.mxu0 (!%p340_p3), %v1852_v5  ;;  %v1724_v33 = vpack.c.bf16 (!%p340_p3), %v455_v31, %v454_v30  ;;  %v1751_v35 = vpack.c.bf16 (!%p340_p3), %v550_v34, %v549_v32  ;;  %v457_v37 = vld [vmem:[%s2199_s2 + $0x38] sm:$0xff] (!%p340_p3)  ;;  %v551_v38 = vld [vmem:[%s2201_s4 + $0x40] sm:$0xff] (!%p340_p3)  ;;  %v552_v40 = vld [vmem:[%s2201_s4 + $0x48] sm:$0xff] (!%p340_p3)  ;;  %v637_v34 = vshrl.u32 (!%p340_p3), %v410_v18, 7  ;;  %s1862_s11 = smov (!%p340_p3), 8   ;;  %vm1338_vm7 = vcmask (!%p340_p3), 195584  }
   0xc   : > { %v1727_v39 = vpack.c.bf16 (!%p340_p3), %v457_v37, %v456_v36  ;;  %v1754_v41 = vpack.c.bf16 (!%p340_p3), %v552_v40, %v551_v38  ;;  %v458_v42 = vld [vmem:[%s2199_s2 + $0x40] sm:$0xff] (!%p340_p3)  ;;  %v459_v43 = vld [vmem:[%s2199_s2 + $0x48] sm:$0xff] (!%p340_p3)  ;;  %v553_v44 = vld [vmem:[%s2201_s4 + $0x50] sm:$0xff] (!%p340_p3)  ;;  %vm1351_vm8 = vcmask (!%p340_p3), 261120  }
   0xd   : > { %1746 = vmatpush3.bf16.msra.mxu1 (!%p340_p3), %v1745_v13  ;;  %v1730_v45 = vpack.c.bf16 (!%p340_p3), %v459_v43, %v458_v42  ;;  %v554_v46 = vld [vmem:[%s2201_s4 + $0x58] sm:$0xff] (!%p340_p3)  ;;  %v460_v47 = vld [vmem:[%s2199_s2 + $0x50] sm:$0xff] (!%p340_p3)  ;;  %v555_v50 = vld [vmem:[%s2201_s4 + $0x60] sm:$0xff] (!%p340_p3)  ;;  %vm642_vm4 = vcmp.ge.s32.totalorder (!%p340_p3), %v637_v34, %v1989_v19 }
   0xe   : > { %s2215_s13 = smov (!%p385_p4, %s1842_s13), 1  ;;  %1747 = vmatprep.subr.bf16.mxu1 %v1852_v5  ;;  %1722 = vmatpush3.bf16.msra.mxu0 %v1721_v14  ;;  %v461_v48 = vld [vmem:[%s2199_s2 + $0x58] sm:$0xff]  ;;  %v1757_v49 = vpack.c.bf16 %v554_v46, %v553_v44  ;;  %v556_v51 = vld [vmem:[%s2201_s4 + $0x68] sm:$0xff]  ;;  %v462_v55 = vld [vmem:[%s2199_s2 + $0x60] sm:$0xff] }
   0xf   : > { %s1938_s17 = sshll.u32 %s2215_s13, 3  ;;  %1723 = vmatprep.subr.bf16.mxu0 %v1852_v5  ;;  %v1733_v53 = vpack.c.bf16 %v461_v48, %v460_v47  ;;  %v1760_v54 = vpack.c.bf16 %v556_v51, %v555_v50  ;;  %v463_v56 = vld [vmem:[%s2199_s2 + $0x68] sm:$0xff]  ;;  %v557_v57 = vld [vmem:[%s2201_s4 + $0x70] sm:$0xff]  ;;  %v558_v58 = vld [vmem:[%s2201_s4 + $0x78] sm:$0xff]  ;;  %s1856_s13 = smov 104  }
  0x10   : > { %s395_s20 = scalar_lea.vmem %s2198_s1, %s1938_s17  ;;  %s391_s23 = scalar_lea.vmem %s2197_s0, %s1938_s17  ;;  %v1736_v59 = vpack.c.bf16 %v463_v56, %v462_v55  ;;  %v1763_v60 = vpack.c.bf16 %v558_v58, %v557_v57  ;;  %v464_v61 = vld [vmem:[%s2199_s2 + $0x70] sm:$0xff]  ;;  %v465_v62 = vld [vmem:[%s2199_s2 + $0x78] sm:$0xff]  ;;  %v1521_v9 = vld [vmem:[%s2205_s8] ss:$0 sm:$0xff] }
  0x11   : > { %v435_v0 = vld [vmem:[%s395_s20] sm:$0xff]  ;;  %1749 = vmatpush3.bf16.msra.mxu1 %v1748_v17  ;;  %v1739_v63 = vpack.c.bf16 %v465_v62, %v464_v61  ;;  %vm2129_vm5 = vmand %vm641_vm3, %vm642_vm4  ;;  %s1859_s20 = smov 80  }
  0x12   : > { %436 = vadd.xlane.f32.xlu0 %v435_v0  ;;  %v1948_v1 = vld [vmem:[%s391_s23] sm:$0xff]  ;;  %1750 = vmatprep.subr.bf16.mxu1 %v1852_v5 }
  0x13   : > { %1725 = vmatpush3.bf16.msra.mxu0 %v1724_v33  ;;  %v1522_v11 = vld [vmem:[%s2206_s9] ss:$0 sm:$0xff] }
  0x14   : > { %1726 = vmatprep.subr.bf16.mxu0 %v1852_v5 }
  0x15   : > { %1752 = vmatpush3.bf16.msra.mxu1 %v1751_v35 }
  0x16   : > { %406 = vadd.xlane.f32.xlu0 %v1948_v1  ;;  %1753 = vmatprep.subr.bf16.mxu1 %v1852_v5 }
  0x17   : > { %1728 = vmatpush3.bf16.msra.mxu0 %v1727_v39 }
  0x18   : > { %1729 = vmatprep.subr.bf16.mxu0 %v1852_v5 }
  0x19   : > { %1755 = vmatpush3.bf16.msra.mxu1 %v1754_v41 }
  0x1a   : > { %1756 = vmatprep.subr.bf16.mxu1 %v1852_v5 }
  0x1b   : > { %1731 = vmatpush3.bf16.msra.mxu0 %v1730_v45 }
  0x1c   : > { %1732 = vmatprep.subr.bf16.mxu0 %v1852_v5 }
  0x1d   : > { %1758 = vmatpush3.bf16.msra.mxu1 %v1757_v49 }
  0x1e   : > { %1759 = vmatprep.subr.bf16.mxu1 %v1852_v5 }
  0x1f   : > { %1734 = vmatpush3.bf16.msra.mxu0 %v1733_v53 }
  0x20   : > { %1735 = vmatprep.subr.bf16.mxu0 %v1852_v5 }
  0x21   : > { %1761 = vmatpush3.bf16.msra.mxu1 %v1760_v54 }
  0x22   : > { %1762 = vmatprep.subr.bf16.mxu1 %v1852_v5 }
  0x23   : > { %1737 = vmatpush3.bf16.msra.mxu0 %v1736_v59 }
  0x24   : > { %1738 = vmatprep.subr.bf16.mxu0 %v1852_v5 }
  0x25   : > { %1764 = vmatpush3.bf16.msra.mxu1 %v1763_v60 }
  0x26   : > { %1666 = vmatprep.subr.mxu1 %v1854_v52 }
  0x27   : > { %1740 = vmatpush3.bf16.msra.mxu0 %v1739_v63 }
  0x28   : > { %1676 = vmatprep.subr.mxu0 %v1854_v52 }
  0x9f   : > { %v437_v20 = vpop.xlane.xlu0 %436 }
  0xa0   : > { %v438_v21 = vmul.f32 0.03125, %v437_v20  ;;  %v1524_v20 = vld [vmem:[%s2202_s5] ss:$0 sm:$0xff] }
  0xa2   : > { %v439_v22 = vsub.f32 %v435_v0, %v438_v21 }
  0xa3   : > { %v407_v23 = vpop.xlane.xlu0 %406 }
  0xa4   : > { %v408_v24 = vmul.f32 0.03125, %v407_v23  ;;  %v1992_v25 = vsel %vm412_vm0, %v439_v22, 0.0 }
  0xa5   : > { %v441_v26 = vmul.f32 %v1992_v25, %v1992_v25 }
  0xa6   : > { %v409_v27 = vsub.f32 %v1948_v1, %v408_v24  ;;  %v1523_v24 = vld [vmem:[%s2200_s3] ss:$0 sm:$0xff] }
  0xa7   : > { %442 = vadd.xlane.f32.xlu1 %v441_v26 }
  0xa8   : > { %v1997_v28 = vsel %vm412_vm0, %v409_v27, 0.0 }
  0xa9   : > { %v414_v29 = vmul.f32 %v1997_v28, %v1997_v28 }
  0xab   : > { %415 = vadd.xlane.f32.xlu1 %v414_v29 }
 0x134   : > { %v443_v0 = vpop.xlane.xlu1 %442 }
 0x135   : > { %v444_v2 = vmul.f32 0.03125, %v443_v0 }
 0x137   : > { %v445_v3 = vadd.f32 1e-05, %v444_v2 }
 0x138   : > { %v416_v4 = vpop.xlane.xlu1 %415 }
 0x139   : > { %1808 = vrsqrt.f32 %v445_v3  ;;  %v417_v6 = vmul.f32 0.03125, %v416_v4 }
 0x13b   : > { %v418_v7 = vadd.f32 1e-05, %v417_v6 }
 0x13d   : > { %1810 = vrsqrt.f32 %v418_v7 }
 0x143   : > { %v1809_v8 = vpop.eup %1808 }
 0x144   : > { %v447_v10 = vmul.f32 %v1809_v8, %v1992_v25 }
 0x146   : > { %v448_v12 = vmul.f32 %v1521_v9, %v447_v10 }
 0x147   : > { %v1811_v13 = vpop.eup %1810 }
 0x148   : > { %v449_v14 = vadd.f32 %v1522_v11, %v448_v12  ;;  %v420_v15 = vmul.f32 %v1811_v13, %v1997_v28 }
 0x14a   : > { %1664 = vmatmul.mubr.f32.vlgmr.msra.gmra.mrb[0].mxu1 %v449_v14  ;;  %v427_v16 = vmul.f32 %v1521_v9, %v420_v15 }
 0x14b   : > { %1668 = vmatprep.mubr.msk.f32.mxu1 %vm1853_vm1, %v1854_v52 }
 0x14c   : > { %v434_v17 = vadd.f32 %v1522_v11, %v427_v16 }
 0x14e   : > { %1629 = vmatmul.mubr.f32.vlgmr.msra.gmra.mrb[0].mxu0 %v434_v17 }
 0x14f   : > { %1678 = vmatprep.mubr.msk.f32.mxu0 %vm1853_vm1, %v1854_v52 }
 0x21d   : > { %v632_v21 = vpop.f32.mrb[0].mxu1 }
 0x21e   : > { %v2097_v22 = vadd.f32 %v1524_v20, %v632_v21  ;;  %v1665_v23 = vpop.f32.mrb[1].mxu1 }
 0x220   : > { %1667 = vmatpush3.xpose.msk.msra.mxu1 %vm644_vm2, %v2097_v22  ;;  %815 = vrot.lane.b32.xlu0 %v2097_v22, %s1855_s12 }
 0x221   : > { %v539_v25 = vpop.f32.mrb[0].mxu0  ;;  %1671 = vmatprep.subr.mxu1 %v1854_v52 }
 0x222   : > { %v540_v26 = vadd.f32 %v1523_v24, %v539_v25  ;;  %v1630_v27 = vpop.f32.mrb[1].mxu0 }
 0x224   : > { %1155 = vrot.lane.b32.xlu0 %v2097_v22, %s1856_s13  ;;  %813 = vrot.lane.b32.xlu1 %v540_v26, %s1855_s12  ;;  %s1863_s12 = smov 16  }
 0x225   : > { %1669 = vmatmul.mubr.msk.f32.vlgmr.msra.gmra.mrb[2].mxu1 %vm644_vm2, %v540_v26 }
 0x226   : > { %1673 = vmatprep.mubr.msk.f32.mxu1 %vm1853_vm1, %v1854_v52 }
 0x228   : > { %985 = vrot.lane.b32.xlu1 %v2097_v22, %s1857_s18 }
 0x22c   : > { %983 = vrot.lane.b32.xlu1 %v540_v26, %s1857_s18 }
 0x230   : > { %1153 = vrot.lane.b32.xlu1 %v540_v26, %s1856_s13  ;;  %s1864_s13 = smov 24  }
 0x292   : > { %v816_v28 = vpop.permute.xlu0 %815 }
 0x293   : > { %1677 = vmatpush3.xpose.msk.msra.mxu0 %vm644_vm2, %v816_v28 }
 0x294   : > { %1686 = vmatprep.subr.mxu0 %v1854_v52 }
 0x296   : > { %v814_v29 = vpop.permute.xlu1 %813  ;;  %v1156_v32 = vpop.permute.xlu0 %1155 }
 0x297   : > { %1679 = vmatmul.mubr.msk.f32.vlgmr.msra.gmra.mrb[2].mxu0 %vm644_vm2, %v814_v29 }
 0x298   : > { %1688 = vmatprep.mubr.msk.f32.mxu0 %vm1853_vm1, %v1854_v52 }
 0x29a   : > { %v986_v30 = vpop.permute.xlu1 %985 }
 0x29b   : > { %1687 = vmatpush3.xpose.msk.msra.mxu0 %vm644_vm2, %v986_v30 }
 0x29c   : > { %1696 = vmatprep.subr.mxu0 %v1854_v52 }
 0x29e   : > { %v984_v31 = vpop.permute.xlu1 %983 }
 0x29f   : > { %1689 = vmatmul.mubr.msk.f32.vlgmr.msra.gmra.mrb[4].mxu0 %vm644_vm2, %v984_v31 }
 0x2a0   : > { %1697 = vmatpush3.xpose.msk.msra.mxu0 %vm644_vm2, %v1156_v32  ;;  %1698 = vmatprep.mubr.msk.f32.mxu0 %vm1853_vm1, %v1854_v52 }
 0x2a1   : > { %1765 = vmatprep.subr.bf16.mxu0 %v1852_v5 }
 0x2a2   : > { %v1154_v33 = vpop.permute.xlu1 %1153 }
 0x2a3   : > { %1699 = vmatmul.mubr.msk.f32.vlgmr.msra.gmra.mrb[6].mxu0 %vm644_vm2, %v1154_v33 }
 0x2a4   : > { %1714 = vmatprep.mubr.msk.f32.mxu0 %vm1853_vm1, %v1854_v52 }
 0x2f8   : > { %v717_v35 = vpop.f32.mrb[2].mxu1 }
 0x2f9   : > { %v721_v37 = vmul.f32 0.35355338, %v717_v35  ;;  %v1670_v38 = vpop.f32.mrb[3].mxu1 }
 0x2fb   : > { %v722_v39 = vsel %vm2129_vm5, %v721_v37, -inf }
 0x2fc   : > { %v723_v40 = vsel %vm644_vm2, %v722_v39, -inf }
 0x2fd   : > { %724 = vmax.xlane.f32.xlu0 %v723_v40 }
 0x36a   : > { %v887_v41 = vpop.f32.mrb[2].mxu0 }
 0x36b   : > { %v891_v42 = vmul.f32 0.35355338, %v887_v41  ;;  %v1680_v18 = vpop.f32.mrb[3].mxu0 }
 0x36d   : > { %v892_v43 = vsel %vm2129_vm5, %v891_v42, -inf }
 0x36e   : > { %v893_v19 = vsel %vm644_vm2, %v892_v43, -inf }
 0x36f   : > { %894 = vmax.xlane.f32.xlu1 %v893_v19  ;;  %v1340_v19 = vld [vmem:[%s2203_s6] sm:$0xff] }
 0x372   : > { %v1057_v44 = vpop.f32.mrb[4].mxu0 }
 0x373   : > { %v1061_v45 = vmul.f32 0.35355338, %v1057_v44  ;;  %v1690_v46 = vpop.f32.mrb[5].mxu0  ;;  %v1342_v44 = vld [vmem:[%s2203_s6 + $0x10] sm:$0xff] }
 0x374   : > { %v1343_v46 = vld [vmem:[%s2203_s6 + $0x18] sm:$0xff] }
 0x375   : > { %v1062_v47 = vsel %vm2129_vm5, %v1061_v45, -inf }
 0x376   : > { %v1227_v48 = vpop.f32.mrb[6].mxu0  ;;  %v1063_v49 = vsel %vm644_vm2, %v1062_v47, -inf }
 0x377   : > { %v1231_v50 = vmul.f32 0.35355338, %v1227_v48  ;;  %1064 = vmax.xlane.f32.xlu0 %v1063_v49  ;;  %v1700_v51 = vpop.f32.mrb[7].mxu0 }
 0x379   : > { %v1232_v53 = vsel %vm2129_vm5, %v1231_v50, -inf }
 0x37a   : > { %v1233_v54 = vsel %vm644_vm2, %v1232_v53, -inf }
 0x37b   : > { %1234 = vmax.xlane.f32.xlu0 %v1233_v54 }
 0x38a   : > { %v725_v55 = vpop.xlane.xlu0 %724 }
 0x38b   : > { %v726_v56 = vsub.f32 %v722_v39, %v725_v55 }
 0x38d   : > { %v727_v57 = vmul.f32 1.442695, %v726_v56 }
 0x38f   : > { %1812 = vpow2.f32 %v727_v57 }
 0x399   : > { %v1813_v58 = vpop.eup %1812 }
 0x39a   : > { %v729_v59 = vsel %vm644_vm2, %v1813_v58, 0.0 }
 0x39b   : > { %730 = vadd.xlane.f32.xlu0 %v729_v59 }
 0x3fc   : > { %v895_v60 = vpop.xlane.xlu1 %894 }
 0x3fd   : > { %v896_v61 = vsub.f32 %v892_v43, %v895_v60  ;;  %v1537_v60 = vld [vmem:[%s2204_s7] ss:$0 sm:$0xff] }
 0x3ff   : > { %v897_v62 = vmul.f32 1.442695, %v896_v61 }
 0x401   : > { %1814 = vpow2.f32 %v897_v62 }
 0x404   : > { %v1065_v63 = vpop.xlane.xlu0 %1064 }
 0x405   : > { %v1066_v0 = vsub.f32 %v1062_v47, %v1065_v63  ;;  %v1769_v47 = vpack.c.bf16 %v1343_v46, %v1342_v44 }
 0x407   : > { %v1067_v2 = vmul.f32 1.442695, %v1066_v0 }
 0x408   : > { %v1235_v8 = vpop.xlane.xlu0 %1234 }
 0x409   : > { %1816 = vpow2.f32 %v1067_v2  ;;  %v1236_v9 = vsub.f32 %v1232_v53, %v1235_v8 }
 0x40b   : > { %v1815_v3 = vpop.eup %1814  ;;  %v1237_v10 = vmul.f32 1.442695, %v1236_v9 }
 0x40c   : > { %v899_v4 = vsel %vm644_vm2, %v1815_v3, 0.0 }
 0x40d   : > { %900 = vadd.xlane.f32.xlu1 %v899_v4  ;;  %1818 = vpow2.f32 %v1237_v10 }
 0x413   : > { %v1817_v6 = vpop.eup %1816 }
 0x414   : > { %v1069_v7 = vsel %vm644_vm2, %v1817_v6, 0.0 }
 0x415   : > { %1070 = vadd.xlane.f32.xlu0 %v1069_v7 }
 0x417   : > { %v1819_v11 = vpop.eup %1818 }
 0x418   : > { %v1239_v12 = vsel %vm644_vm2, %v1819_v11, 0.0 }
 0x41e   : > { %907 = vrot.lane.b32.xlu1 %v2097_v22, %s1858_s19 }
 0x422   : > { %1077 = vrot.lane.b32.xlu1 %v2097_v22, %s1859_s20 }
 0x428   : > { %v731_v13 = vpop.xlane.xlu0 %730 }
 0x429   : > { %1820 = vrcp.f32 %v731_v13 }
 0x42b   : > { %737 = vrot.lane.b32.xlu0 %v2097_v22, %s1860_s21 }
 0x433   : > { %v1821_v14 = vpop.eup %1820 }
 0x434   : > { %v733_v15 = vmul.f32 %v1821_v14, %v731_v13 }
 0x436   : > { %v734_v17 = vsub.f32 2.0, %v733_v15 }
 0x438   : > { %v735_v20 = vmul.f32 %v1821_v14, %v734_v17 }
 0x43a   : > { %v736_v24 = vmul.f32 %v1813_v58, %v735_v20 }
 0x446   : > { %1240 = vadd.xlane.f32.xlu1 %v1239_v12 }
 0x457   : > { %1247 = vrot.lane.b32.xlu1 %v2097_v22, %s1861_s22  ;;  %s402_s22 = scalar_lea.vmem %s2207_s10, %s1938_s17 }
 0x49a   : > { %v901_v16 = vpop.xlane.xlu1 %900 }
 0x49b   : > { %1822 = vrcp.f32 %v901_v16 }
 0x49e   : > { %v908_v28 = vpop.permute.xlu1 %907 }
 0x4a2   : > { %v1071_v21 = vpop.xlane.xlu0 %1070  ;;  %v1078_v31 = vpop.permute.xlu1 %1077 }
 0x4a3   : > { %1824 = vrcp.f32 %v1071_v21 }
 0x4a5   : > { %v1823_v23 = vpop.eup %1822 }
 0x4a6   : > { %v903_v25 = vmul.f32 %v1823_v23, %v901_v16  ;;  %v738_v26 = vpop.permute.xlu0 %737 }
 0x4a7   : > { %1672 = vmatpush3.msra.mxu1 %v738_v26 }
 0x4a8   : > { %v904_v27 = vsub.f32 2.0, %v903_v25  ;;  %1674 = vmatmul.mubr.msk.f32.vlgmr.msra.gmra.mrb[4].mxu1 %vm644_vm2, %v736_v24  ;;  %1681 = vmatprep.subr.mxu1 %v1854_v52 }
 0x4a9   : > { %1682 = vmatpush3.msra.mxu1 %v908_v28  ;;  %1683 = vmatprep.mubr.msk.f32.mxu1 %vm1853_vm1, %v1854_v52 }
 0x4aa   : > { %v905_v22 = vmul.f32 %v1823_v23, %v904_v27  ;;  %1691 = vmatprep.subr.mxu1 %v1854_v52 }
 0x4ac   : > { %v906_v29 = vmul.f32 %v1815_v3, %v905_v22 }
 0x4ad   : > { %v1825_v30 = vpop.eup %1824 }
 0x4ae   : > { %v1073_v32 = vmul.f32 %v1825_v30, %v1071_v21  ;;  %1684 = vmatmul.mubr.msk.f32.vlgmr.msra.gmra.mrb[6].mxu1 %vm644_vm2, %v906_v29 }
 0x4af   : > { %1692 = vmatpush3.msra.mxu1 %v1078_v31  ;;  %1693 = vmatprep.mubr.msk.f32.mxu1 %vm1853_vm1, %v1854_v52 }
 0x4b0   : > { %v1074_v33 = vsub.f32 2.0, %v1073_v32  ;;  %1701 = vmatprep.subr.mxu1 %v1854_v52 }
 0x4b2   : > { %v1075_v34 = vmul.f32 %v1825_v30, %v1074_v33 }
 0x4b4   : > { %v1076_v35 = vmul.f32 %v1817_v6, %v1075_v34 }
 0x4b6   : > { %1694 = vmatmul.mubr.msk.f32.vlgmr.msra.gmra.mrb[8].mxu1 %vm644_vm2, %v1076_v35 }
 0x4b7   : > { %1703 = vmatprep.mubr.msk.f32.mxu1 %vm1853_vm1, %v1854_v52  ;;  %v1341_v52 = vld [vmem:[%s2203_s6 + $0x8] sm:$0xff] }
 0x4b8   : > { %v1766_v45 = vpack.c.bf16 %v1341_v52, %v1340_v19 }
 0x4ba   : > { %1767 = vmatpush3.bf16.msra.mxu0 %v1766_v45 }
 0x4bb   : > { %1768 = vmatprep.subr.bf16.mxu0 %v1852_v5 }
 0x4be   : > { %1770 = vmatpush3.bf16.msra.mxu0 %v1769_v47 }
 0x4d3   : > { %v1241_v36 = vpop.xlane.xlu1 %1240 }
 0x4d4   : > { %1826 = vrcp.f32 %v1241_v36 }
 0x4d7   : > { %v1248_v37 = vpop.permute.xlu1 %1247 }
 0x4d8   : > { %1702 = vmatpush3.msra.mxu1 %v1248_v37 }
 0x4de   : > { %v1827_v38 = vpop.eup %1826 }
 0x4df   : > { %v1243_v39 = vmul.f32 %v1827_v38, %v1241_v36 }
 0x4e1   : > { %v1244_v40 = vsub.f32 2.0, %v1243_v39 }
 0x4e3   : > { %v1245_v41 = vmul.f32 %v1827_v38, %v1244_v40 }
 0x4e5   : > { %v1246_v42 = vmul.f32 %v1819_v11, %v1245_v41 }
 0x4e7   : > { %1704 = vmatmul.mubr.msk.f32.vlgmr.msra.gmra.mrb[10].mxu1 %vm644_vm2, %v1246_v42 }
 0x57b   : > { %v809_v18 = vpop.f32.mrb[4].mxu1 }
 0x57c   : > { %v1675_v43 = vpop.f32.mrb[5].mxu1 }
 0x581   : > { %v979_v48 = vpop.f32.mrb[6].mxu1 }
 0x582   : > { %1324 = vrot.lane.b32.xlu0 %v979_v48, %s1862_s11  ;;  %v1685_v49 = vpop.f32.mrb[7].mxu1 }
 0x589   : > { %v1149_v50 = vpop.f32.mrb[8].mxu1 }
 0x58a   : > { %1328 = vrot.lane.b32.xlu1 %v1149_v50, %s1863_s12  ;;  %v1695_v51 = vpop.f32.mrb[9].mxu1 }
 0x5ba   : > { %v1319_v53 = vpop.f32.mrb[10].mxu1 }
 0x5bb   : > { %1332 = vrot.lane.b32.xlu0 %v1319_v53, %s1864_s13  ;;  %v1705_v54 = vpop.f32.mrb[11].mxu1 }
 0x5f4   : > { %v1325_v55 = vpop.permute.xlu0 %1324 }
 0x5f5   : > { %v1335_v57 = vsel %vm644_vm2, %v809_v18, %v1325_v55 }
 0x5fc   : > { %v1329_v56 = vpop.permute.xlu1 %1328 }
 0x5fd   : > { %v1337_v5 = vsel %vm1336_vm6, %v1335_v57, %v1329_v56 }
 0x62d   : > { %v1333_v58 = vpop.permute.xlu0 %1332 }
 0x62e   : > { %v1339_v59 = vsel %vm1338_vm7, %v1337_v5, %v1333_v58 }
 0x62f   : > { %1715 = vmatmul.mubr.msk.f32.vlgmr.msra.gmra.mrb[8].mxu0 %vm1351_vm8, %v1339_v59 }
 0x702   : > { %v1421_v61 = vpop.f32.mrb[8].mxu0 }
 0x703   : > { %v1422_v62 = vadd.f32 %v1537_v60, %v1421_v61  ;;  %v1716_v63 = vpop.f32.mrb[9].mxu0 }
 0x705   : > { %v1425_v0 = vadd.f32 %v1422_v62, %v1948_v1 }
 0x707   : > { %1426 = vst [vmem:[%s402_s22] sm:$0xff] %v1425_v0 }
 0x708 PF: > { %s20_s15 = sadd.s32 1, %s1850_s15   ;;  %s2210_s13 = smov %s1846_s14 }
 0x709   : > { %p17_p5 = scmp.ge.s32.totalorder %s20_s15, 4   ;;  %s2211_s14 = smov %s2213_s16 }
 0x70b   :  { %19 = sbr.rel (!%p17_p5) target bundleno = 2 (0x2), region = 93 }

</bundles_post_ra>
